<compile_context>
chip_gen: v7x
topology: tpu7x:2x2x1
jax: 0.10.0
libtpu: 0.0.40
codegen_flags: <defaults>
</compile_context>

<pallas_src>
import functools

import jax
import jax.numpy as jnp
import numpy as np
from jax import lax
from jax.experimental import pallas as pl
from jax.experimental.pallas import tpu as pltpu

F32 = jnp.float32
BF16 = jnp.bfloat16
BN_EPS = 1e-5


# ------------------------------ fused kernel --------------------------------

def _fused_forward_kernel(img_ref,                         # (1, H, W, Cin)
                          gamma_ref,                       # (1, 2I)  [gamma_cam]*I ++ [gamma_pam]*I
                          bbw_ref, bbb_ref,                # (Cin, F) bf16, (1, F)
                          w1_ref, b1_ref,                  # (9F, 2I) bf16, (1, 2I)
                          wqv_ref, bqv_ref,                # (I, Cq+I) bf16, (1, Cq+I)
                          wk_ref, bk_ref,                  # (I, Cq) bf16, (Cq, 1)
                          w2_ref, b2_ref,                  # (18I, 2F) bf16 block-diag, (1, 2F)
                          wfc1_ref, bfc1_ref,              # (2F, F), (1, F)
                          wfc2_ref, bfc2_ref,              # (F, T), (1, T)
                          out_ref,                         # (1, 1, T)
                          pad1_ref, pad2_ref,              # VMEM halo scratch
                          *, H, W, F, I, Cq):
    HW = H * W

    def fill_halo(pad_ref, x2d):
        # Zero only the 1-px border (megacore-safe: done every step, but the
        # bulk interior zero-sweep is gone); interior is fully overwritten.
        c = pad_ref.shape[-1]
        zrow = jnp.zeros((1, W + 2, c), F32)
        zcol = jnp.zeros((H + 2, 1, c), F32)
        pad_ref[pl.ds(0, 1), :, :] = zrow
        pad_ref[pl.ds(H + 1, 1), :, :] = zrow
        pad_ref[:, pl.ds(0, 1), :] = zcol
        pad_ref[:, pl.ds(W + 1, 1), :] = zcol
        pad_ref[pl.ds(1, H), pl.ds(1, W), :] = x2d.reshape(H, W, c)

    def conv3x3(pad_ref, w_ref, b_ref):
        # 3x3 conv as ONE matmul: concat the 9 shifted taps along lanes into a
        # (HW, 9*Cin) patch matrix, cast to bf16 once, multiply by (9*Cin, Cout).
        c = pad_ref.shape[-1]
        taps = [pad_ref[pl.ds(kh, H), pl.ds(kw, W), :].reshape(HW, c)
                for kh in range(3) for kw in range(3)]
        patch = jnp.concatenate(taps, axis=-1).astype(BF16)          # (HW, 9c)
        y = jnp.dot(patch, w_ref[...], preferred_element_type=F32) + b_ref[...]
        return jnp.maximum(y, 0.0)

    # --- backbone.forward_features stand-in: pointwise projection + ReLU ---
    # TODO(synk): the pretrained timm backbone has no clean Pallas equivalent;
    # replaced by a deterministic 1x1-conv + ReLU feature extractor.
    img = img_ref[0].reshape(HW, -1).astype(BF16)                    # (HW, Cin)
    enc = jnp.maximum(jnp.dot(img, bbw_ref[...], preferred_element_type=F32)
                      + bbb_ref[...], 0.0)                           # (HW, F)

    # --- global average pool, fused as an epilogue ---
    global_feas = jnp.sum(enc, axis=0, keepdims=True) * (1.0 / HW)   # (1, F)

    # --- CBAM conv1_c & conv1_s fused into one 3x3 conv (BN folded, ReLU) ---
    fill_halo(pad1_ref, enc)
    y1 = conv3x3(pad1_ref, w1_ref, b1_ref)                           # (HW, 2I)
    feat1 = y1[:, :I]          # channel-attention branch input
    feat2 = y1[:, I:]          # position-attention branch input

    # --- CAM: channel attention ---
    f1b = feat1.astype(BF16)
    energy_c = lax.dot_general(f1b, f1b, (((0,), (0,)), ((), ())),
                               preferred_element_type=F32)           # (I, I) = X X^T
    e_new = jnp.max(energy_c, axis=-1, keepdims=True) - energy_c
    e_new = e_new - jnp.max(e_new, axis=-1, keepdims=True)           # stable softmax
    p_c = jnp.exp(e_new)
    attn_c = p_c * pl.reciprocal(jnp.sum(p_c, axis=-1, keepdims=True), approx=True)
    cam_out = lax.dot_general(f1b, attn_c.astype(BF16), (((1,), (1,)), ((), ())),
                              preferred_element_type=F32)            # (HW, I) = (A X)^T

    # --- PAM: position attention ---
    f2b = feat2.astype(BF16)
    qv = jnp.dot(f2b, wqv_ref[...], preferred_element_type=F32) + bqv_ref[...]   # (HW, Cq+I)
    q = qv[:, :Cq]                                                   # (HW, Cq)
    v = qv[:, Cq:]                                                   # (HW, I)
    kT = lax.dot_general(wk_ref[...], f2b, (((0,), (1,)), ((), ())),
                         preferred_element_type=F32) + bk_ref[...]   # (Cq, HW)
    if Cq == 1:
        # rank-1 outer product: broadcast multiply on the VPU, skip the MXU.
        energy_s = q * kT                                            # (HW, HW)
    else:
        energy_s = jnp.dot(q.astype(BF16), kT.astype(BF16),
                           preferred_element_type=F32)
    energy_s = energy_s - jnp.max(energy_s, axis=-1, keepdims=True)
    p_s = jnp.exp(energy_s)
    attn_s = p_s * pl.reciprocal(jnp.sum(p_s, axis=-1, keepdims=True), approx=True)
    pam_out = jnp.dot(attn_s.astype(BF16), v.astype(BF16),
                      preferred_element_type=F32)                    # (HW, I)

    # --- residuals stay concatenated: one fused gamma*att + y1 over (HW, 2I) ---
    att = jnp.concatenate([cam_out, pam_out], axis=-1)               # (HW, 2I)
    y_att = gamma_ref[...] * att + y1                                # [chnl | spat]

    # --- conv2_c & conv2_a fused: one halo, one block-diagonal matmul ---
    fill_halo(pad2_ref, y_att)
    y2 = conv3x3(pad2_ref, w2_ref, b2_ref)                           # (HW, 2F)

    # --- local features: row-sum of (chnl_att + spat_att), fused epilogue ---
    local_feas = jnp.sum(y2[:, :F] + y2[:, F:], axis=0, keepdims=True)   # (1, F)

    # --- classifier head (BN1d folded into fc1; dropouts identity in eval) ---
    all_feas = jnp.concatenate([global_feas, local_feas], axis=-1)   # (1, 2F)
    h1 = jnp.maximum(jnp.dot(all_feas, wfc1_ref[...], preferred_element_type=F32)
                     + bfc1_ref[...], 0.0)                           # (1, F)
    out = jnp.dot(h1, wfc2_ref[...], preferred_element_type=F32) + bfc2_ref[...]
    out_ref[0] = out.astype(out_ref.dtype)


# --------------------------- host-side param prep ----------------------------

def prepare_params(p):
    """Fold BN into weights, build patch-matmul conv weights, fuse branches, cast to bf16."""
    F = p['bb_w'].shape[1]
    I = p['c1c_w'].shape[0]
    Cq = p['q_w'].shape[0]

    def fold_conv3x3(w_oihw, bn):
        cout, cin = w_oihw.shape[0], w_oihw.shape[1]
        s = bn['g'] / jnp.sqrt(bn['v'] + BN_EPS)
        b = bn['b'] - bn['m'] * s
        # (Cout, Cin, 3, 3) -> (9, Cin, Cout), BN scale folded per output channel.
        w9 = jnp.transpose(w_oihw, (2, 3, 1, 0)).reshape(9, cin, cout) * s
        return w9, b

    # conv1_c | conv1_s fused along output channels; taps flattened along K.
    w1c9, b1c = fold_conv3x3(p['c1c_w'], p['c1c_bn'])    # (9, F, I)
    w1s9, b1s = fold_conv3x3(p['c1s_w'], p['c1s_bn'])
    w1 = jnp.concatenate([w1c9, w1s9], axis=2).reshape(9 * F, 2 * I)
    b1 = jnp.concatenate([b1c, b1s]).reshape(1, 2 * I)

    # conv2_c / conv2_a fused via a per-tap block-diagonal weight:
    #   input channels [0:I]   (chnl) -> output cols [0:F]   (conv2_c)
    #   input channels [I:2I]  (spat) -> output cols [F:2F]  (conv2_a)
    w2c9, b2c = fold_conv3x3(p['c2c_w'], p['c2c_bn'])    # (9, I, F)
    w2a9, b2a = fold_conv3x3(p['c2a_w'], p['c2a_bn'])
    zero = jnp.zeros((9, I, F), F32)
    top = jnp.concatenate([w2c9, zero], axis=2)          # (9, I, 2F)
    bot = jnp.concatenate([zero, w2a9], axis=2)          # (9, I, 2F)
    w2 = jnp.concatenate([top, bot], axis=1).reshape(9 * 2 * I, 2 * F)
    b2 = jnp.concatenate([b2c, b2a]).reshape(1, 2 * F)

    # PAM 1x1 convs: query|value fused into one matmul; key kept separate
    # (its (Cq, HW) row form avoids an in-kernel transpose).
    wq = p['q_w'].reshape(Cq, I).T                       # (I, Cq)
    wv = p['v_w'].reshape(I, I).T                        # (I, I)
    wk = p['k_w'].reshape(Cq, I).T                       # (I, Cq)

    # fc1 + BN1d fold (single (2F, F) weight for concat(global, local)).
    s1 = p['bn1']['g'] / jnp.sqrt(p['bn1']['v'] + BN_EPS)
    wfc1 = p['fc1_w'] * s1[None, :]
    bfc1 = ((p['fc1_b'] - p['bn1']['m']) * s1 + p['bn1']['b']).reshape(1, F)

    # per-branch gamma broadcast to a (1, 2I) lane vector.
    gamma = jnp.concatenate([jnp.broadcast_to(p['gamma_cam'], (I,)),
                             jnp.broadcast_to(p['gamma_pam'], (I,))]).reshape(1, 2 * I)

    return dict(
        gamma=gamma.astype(F32),
        bbw=p['bb_w'].astype(BF16), bbb=p['bb_b'].reshape(1, F).astype(F32),
        w1=w1.astype(BF16), b1=b1.astype(F32),
        wqv=jnp.concatenate([wq, wv], axis=1).astype(BF16),            # (I, Cq+I)
        bqv=jnp.concatenate([p['q_b'], p['v_b']]).reshape(1, Cq + I).astype(F32),
        wk=wk.astype(BF16), bk=p['k_b'].reshape(Cq, 1).astype(F32),
        w2=w2.astype(BF16), b2=b2.astype(F32),
        wfc1=wfc1.astype(F32), bfc1=bfc1.astype(F32),
        wfc2=p['fc2_w'].astype(F32),
        bfc2=p['fc2_b'].reshape(1, -1).astype(F32),
    )


# ------------------------------- forward pass --------------------------------

def forward_pallas(prep, image):
    B, Cin, H, W = image.shape
    F = prep['bbw'].shape[1]
    I = prep['w1'].shape[1] // 2
    Cq = prep['wk'].shape[1]
    T = prep['wfc2'].shape[1]
    HW = H * W

    # single layout change of the tiny input image to channels-last (NHWC).
    img_nhwc = jnp.transpose(image, (0, 2, 3, 1)).astype(F32)

    kernel = functools.partial(_fused_forward_kernel, H=H, W=W, F=F, I=I, Cq=Cq)

    vmem = pl.BlockSpec(memory_space=pltpu.MemorySpace.VMEM)

    # advisory cost estimate for XLA scheduling around the fused call.
    flops = 2 * B * HW * (Cin * F + 9 * F * 2 * I + 2 * I * I
                          + I * (Cq + I) + I * Cq + HW * Cq + HW * I
                          + 9 * 2 * I * 2 * F) \
        + 2 * B * (2 * F * F + F * T)
    transcendentals = B * (HW * HW + I * I + HW + I)
    bytes_accessed = int(
        np.prod(img_nhwc.shape) * 4 + B * T * 4
        + sum(int(np.prod(a.shape)) * a.dtype.itemsize for a in prep.values()))

    # NOTE: for B > 2 one would pack B_tile samples per grid step (stack rows to
    # B_tile*HW) to fill the MXU M dimension and amortize per-step overhead;
    # at B=2 grid=(B,) with "parallel" keeps both v7x TensorCores busy.
    out = pl.pallas_call(
        kernel,
        out_shape=jax.ShapeDtypeStruct((B, 1, T), F32),
        grid=(B,),
        in_specs=[
            pl.BlockSpec((1, H, W, Cin), lambda b: (b, 0, 0, 0)),       # image (NHWC)
            vmem,                                                       # gamma (1, 2I)
            vmem, vmem,                                                 # bbw, bbb
            vmem, vmem,                                                 # w1, b1
            vmem, vmem, vmem, vmem,                                     # wqv, bqv, wk, bk
            vmem, vmem,                                                 # w2, b2
            vmem, vmem,                                                 # wfc1, bfc1
            vmem, vmem,                                                 # wfc2, bfc2
        ],
        out_specs=pl.BlockSpec((1, 1, T), lambda b: (b, 0, 0)),
        scratch_shapes=[
            pltpu.VMEM((H + 2, W + 2, F), F32),          # halo for conv1 (input = enc)
            pltpu.VMEM((H + 2, W + 2, 2 * I), F32),      # halo for fused conv2 (chnl|spat)
        ],
        compiler_params=pltpu.CompilerParams(dimension_semantics=("parallel",)),
        cost_estimate=pl.CostEstimate(flops=int(flops),
                                      transcendentals=int(transcendentals),
                                      bytes_accessed=bytes_accessed),
    )(img_nhwc, prep['gamma'],
      prep['bbw'], prep['bbb'], prep['w1'], prep['b1'],
      prep['wqv'], prep['bqv'], prep['wk'], prep['bk'],
      prep['w2'], prep['b2'],
      prep['wfc1'], prep['bfc1'], prep['wfc2'], prep['bfc2'])
    return out.reshape(B, T)


# -------------------------------- parameters ---------------------------------

def init_params(key, in_ch=3, n_features=32, target_size=4):
    inter = n_features // 4
    cq = max(inter // 8, 1)            # PAM query/key channels (in_dim // 8)
    keys = iter(jax.random.split(key, 64))

    def nrm(shape, s=0.1):
        return jax.random.normal(next(keys), shape, F32) * s

    def pos(shape):
        return jax.random.uniform(next(keys), shape, F32, minval=0.5, maxval=1.5)

    def bn(c):
        return dict(g=pos((c,)), b=nrm((c,)), m=nrm((c,)), v=pos((c,)))

    return dict(
        bb_w=nrm((in_ch, n_features)), bb_b=nrm((n_features,)),
        c1c_w=nrm((inter, n_features, 3, 3)), c1c_bn=bn(inter),
        c1s_w=nrm((inter, n_features, 3, 3)), c1s_bn=bn(inter),
        # torch inits gamma = zeros(1); a deterministic non-zero value is used
        # here so the attention paths are actually exercised.
        gamma_cam=jnp.array([0.5], F32),
        q_w=nrm((cq, inter, 1, 1)), q_b=nrm((cq,)),
        k_w=nrm((cq, inter, 1, 1)), k_b=nrm((cq,)),
        v_w=nrm((inter, inter, 1, 1)), v_b=nrm((inter,)),
        gamma_pam=jnp.array([0.5], F32),
        c2c_w=nrm((n_features, inter, 3, 3)), c2c_bn=bn(n_features),
        c2a_w=nrm((n_features, inter, 3, 3)), c2a_bn=bn(n_features),
        fc1_w=nrm((2 * n_features, n_features)), fc1_b=nrm((n_features,)),
        bn1=bn(n_features),
        fc2_w=nrm((n_features, target_size)), fc2_b=nrm((target_size,)),
    )


# ----------------------------- pure-JAX reference ----------------------------

def _conv3x3_ref(x, w):
    return jax.lax.conv_general_dilated(
        x, w, window_strides=(1, 1), padding=((1, 1), (1, 1)),
        dimension_numbers=('NCHW', 'OIHW', 'NCHW'))


def _conv1x1_ref(x, w, b):
    y = jax.lax.conv_general_dilated(
        x, w, window_strides=(1, 1), padding=((0, 0), (0, 0)),
        dimension_numbers=('NCHW', 'OIHW', 'NCHW'))
    return y + b[None, :, None, None]


def _bn_relu_ref(x, bn):
    s = bn['g'] / jnp.sqrt(bn['v'] + BN_EPS)
    return jnp.maximum(
        x * s[None, :, None, None] + (bn['b'] - bn['m'] * s)[None, :, None, None], 0.0)


def _cam_ref(x, gamma):
    B, C, H, W = x.shape
    xf = x.reshape(B, C, H * W)
    energy = jnp.einsum('bcn,bdn->bcd', xf, xf)
    e_new = jnp.max(energy, axis=-1, keepdims=True) - energy
    attn = jax.nn.softmax(e_new, axis=-1)
    out = jnp.einsum('bcd,bdn->bcn', attn, xf).reshape(B, C, H, W)
    return gamma[0] * out + x


def _pam_ref(x, p):
    B, C, H, W = x.shape
    HW = H * W
    q = _conv1x1_ref(x, p['q_w'], p['q_b']).reshape(B, -1, HW)
    k = _conv1x1_ref(x, p['k_w'], p['k_b']).reshape(B, -1, HW)
    v = _conv1x1_ref(x, p['v_w'], p['v_b']).reshape(B, C, HW)
    energy = jnp.einsum('bci,bcj->bij', q, k)
    attn = jax.nn.softmax(energy, axis=-1)
    out = jnp.einsum('bcj,bij->bci', v, attn).reshape(B, C, H, W)
    return p['gamma_pam'][0] * out + x


def forward_ref(p, image):
    enc = jnp.maximum(
        jnp.einsum('bchw,cf->bfhw', image, p['bb_w'])
        + p['bb_b'][None, :, None, None], 0.0)
    global_feas = jnp.mean(enc, axis=(2, 3))
    feat1 = _bn_relu_ref(_conv3x3_ref(enc, p['c1c_w']), p['c1c_bn'])
    chnl = _cam_ref(feat1, p['gamma_cam'])
    chnl = _bn_relu_ref(_conv3x3_ref(chnl, p['c2c_w']), p['c2c_bn'])
    feat2 = _bn_relu_ref(_conv3x3_ref(enc, p['c1s_w']), p['c1s_bn'])
    spat = _pam_ref(feat2, p)
    spat = _bn_relu_ref(_conv3x3_ref(spat, p['c2a_w']), p['c2a_bn'])
    local_feas = jnp.sum(chnl + spat, axis=(2, 3))
    all_feas = jnp.concatenate([global_feas, local_feas], axis=1)
    s1 = p['bn1']['g'] / jnp.sqrt(p['bn1']['v'] + BN_EPS)
    b1 = (p['fc1_b'] - p['bn1']['m']) * s1 + p['bn1']['b']
    h1 = jnp.maximum((all_feas @ p['fc1_w']) * s1 + b1, 0.0)
    return h1 @ p['fc2_w'] + p['fc2_b']


# ----------------------------------- main -------------------------------------

if __name__ == "__main__":
    key = jax.random.PRNGKey(0)
    pkey, xkey = jax.random.split(key)

    B, Cin, H, W = 2, 3, 8, 8
    n_features, target_size = 32, 4        # inter_channels = 8, PAM q/k channels = 1

    params = init_params(pkey, Cin, n_features, target_size)
    image = jax.random.normal(xkey, (B, Cin, H, W), F32)

    prep = prepare_params(params)
    out = jax.block_until_ready(forward_pallas(prep, image))
    assert out.shape == (B, target_size)

    with jax.default_matmul_precision('highest'):
        ref = jax.block_until_ready(forward_ref(params, image))

    # bf16 MXU operands + approx-reciprocal softmax introduce ~1% drift vs the
    # fully-f32 reference; 5e-2 tolerance covers it with comfortable margin.
    np.testing.assert_allclose(np.asarray(out), np.asarray(ref), atol=5e-2, rtol=5e-2)

    print("KERNEL_OK")
</pallas_src>

<mosaic_0001>
module attributes {stable_mosaic.version = 11 : i64} {
  func.func @_fused_forward_kernel(%arg0: i32, %arg1: memref<1x8x8x3xf32, #tpu.memory_space<vmem>>, %arg2: memref<1x16xf32, #tpu.memory_space<vmem>>, %arg3: memref<3x32xbf16, #tpu.memory_space<vmem>>, %arg4: memref<1x32xf32, #tpu.memory_space<vmem>>, %arg5: memref<288x16xbf16, #tpu.memory_space<vmem>>, %arg6: memref<1x16xf32, #tpu.memory_space<vmem>>, %arg7: memref<8x9xbf16, #tpu.memory_space<vmem>>, %arg8: memref<1x9xf32, #tpu.memory_space<vmem>>, %arg9: memref<8x1xbf16, #tpu.memory_space<vmem>>, %arg10: memref<1x1xf32, #tpu.memory_space<vmem>>, %arg11: memref<144x64xbf16, #tpu.memory_space<vmem>>, %arg12: memref<1x64xf32, #tpu.memory_space<vmem>>, %arg13: memref<64x32xf32, #tpu.memory_space<vmem>>, %arg14: memref<1x32xf32, #tpu.memory_space<vmem>>, %arg15: memref<32x4xf32, #tpu.memory_space<vmem>>, %arg16: memref<1x4xf32, #tpu.memory_space<vmem>>, %arg17: memref<1x1x4xf32, #tpu.memory_space<vmem>>, %arg18: memref<10x10x32xf32, #tpu.memory_space<vmem>>, %arg19: memref<10x10x16xf32, #tpu.memory_space<vmem>>) attributes {dimension_semantics = [#tpu.dimension_semantics<parallel>], iteration_bounds = array<i64: 2>, scalar_prefetch = 0 : i64, scratch_operands = 2 : i64, tpu.core_type = #tpu.core_type<tc>, window_params = [{transform_indices = @transform_0, window_bounds = array<i64: 1, 8, 8, 3>}, {pipeline_mode = #tpu.pipeline_mode<synchronous>, transform_indices = @transform_1, window_bounds = array<i64: 1, 16>}, {pipeline_mode = #tpu.pipeline_mode<synchronous>, transform_indices = @transform_2, window_bounds = array<i64: 3, 32>}, {pipeline_mode = #tpu.pipeline_mode<synchronous>, transform_indices = @transform_3, window_bounds = array<i64: 1, 32>}, {pipeline_mode = #tpu.pipeline_mode<synchronous>, transform_indices = @transform_4, window_bounds = array<i64: 288, 16>}, {pipeline_mode = #tpu.pipeline_mode<synchronous>, transform_indices = @transform_5, window_bounds = array<i64: 1, 16>}, {pipeline_mode = #tpu.pipeline_mode<synchronous>, transform_indices = @transform_6, window_bounds = array<i64: 8, 9>}, {pipeline_mode = #tpu.pipeline_mode<synchronous>, transform_indices = @transform_7, window_bounds = array<i64: 1, 9>}, {pipeline_mode = #tpu.pipeline_mode<synchronous>, transform_indices = @transform_8, window_bounds = array<i64: 8, 1>}, {pipeline_mode = #tpu.pipeline_mode<synchronous>, transform_indices = @transform_9, window_bounds = array<i64: 1, 1>}, {pipeline_mode = #tpu.pipeline_mode<synchronous>, transform_indices = @transform_10, window_bounds = array<i64: 144, 64>}, {pipeline_mode = #tpu.pipeline_mode<synchronous>, transform_indices = @transform_11, window_bounds = array<i64: 1, 64>}, {pipeline_mode = #tpu.pipeline_mode<synchronous>, transform_indices = @transform_12, window_bounds = array<i64: 64, 32>}, {pipeline_mode = #tpu.pipeline_mode<synchronous>, transform_indices = @transform_13, window_bounds = array<i64: 1, 32>}, {pipeline_mode = #tpu.pipeline_mode<synchronous>, transform_indices = @transform_14, window_bounds = array<i64: 32, 4>}, {pipeline_mode = #tpu.pipeline_mode<synchronous>, transform_indices = @transform_15, window_bounds = array<i64: 1, 4>}, {transform_indices = @transform_16, window_bounds = array<i64: 1, 1, 4>}]} {
    %c0 = arith.constant 0 : index
    %c0_0 = arith.constant 0 : index
    %c0_1 = arith.constant 0 : index
    %c0_2 = arith.constant 0 : index
    %0 = vector.load %arg1[%c0, %c0_0, %c0_1, %c0_2] : memref<1x8x8x3xf32, #tpu.memory_space<vmem>>, vector<1x8x8x3xf32>
    %1 = vector.shape_cast %0 : vector<1x8x8x3xf32> to vector<8x8x3xf32>
    %2 = vector.shape_cast %1 : vector<8x8x3xf32> to vector<64x3xf32>
    %3 = arith.truncf %2 : vector<64x3xf32> to vector<64x3xbf16>
    %c0_3 = arith.constant 0 : index
    %c0_4 = arith.constant 0 : index
    %4 = vector.load %arg3[%c0_3, %c0_4] : memref<3x32xbf16, #tpu.memory_space<vmem>>, vector<3x32xbf16>
    %cst = arith.constant dense<0.000000e+00> : vector<64x32xf32>
    %5 = tpu.matmul %3, %4, %cst {dimension_numbers = #tpu.dot_dimension_numbers<[1], [0], [0], [1], [0, 0, 1, 1], [], []>} : vector<64x3xbf16>, vector<3x32xbf16>, vector<64x32xf32> -> vector<64x32xf32>
    %c0_5 = arith.constant 0 : index
    %c0_6 = arith.constant 0 : index
    %6 = vector.load %arg4[%c0_5, %c0_6] : memref<1x32xf32, #tpu.memory_space<vmem>>, vector<1x32xf32>
    %7 = vector.broadcast %6 : vector<1x32xf32> to vector<64x32xf32>
    %8 = arith.addf %5, %7 : vector<64x32xf32>
    %cst_7 = arith.constant 0.000000e+00 : f32
    %9 = vector.broadcast %cst_7 : f32 to vector<64x32xf32>
    %10 = arith.maximumf %8, %9 : vector<64x32xf32>
    %cst_8 = arith.constant dense<0.000000e+00> : vector<32xf32>
    %11 = vector.multi_reduction <add>, %10, %cst_8 [0] : vector<64x32xf32> to vector<32xf32>
    %12 = vector.shape_cast %11 : vector<32xf32> to vector<1x32xf32>
    %cst_9 = arith.constant 1.562500e-02 : f32
    %13 = vector.broadcast %cst_9 : f32 to vector<1x32xf32>
    %14 = arith.mulf %12, %13 : vector<1x32xf32>
    %cst_10 = arith.constant 0.000000e+00 : f32
    %15 = vector.broadcast %cst_10 : f32 to vector<1x10x32xf32>
    %cst_11 = arith.constant 0.000000e+00 : f32
    %16 = vector.broadcast %cst_11 : f32 to vector<10x1x32xf32>
    %c0_12 = arith.constant 0 : index
    %c0_13 = arith.constant 0 : index
    %c0_14 = arith.constant 0 : index
    %17 = vector.load %arg18[%c0_12, %c0_13, %c0_14] : memref<10x10x32xf32, #tpu.memory_space<vmem>>, vector<1x10x32xf32>
    tpu.vector_store %arg18[%c0_12, %c0_13, %c0_14], %15 {strides = array<i32>} : memref<10x10x32xf32, #tpu.memory_space<vmem>>, vector<1x10x32xf32>,
    %c9 = arith.constant 9 : index
    %c0_15 = arith.constant 0 : index
    %c0_16 = arith.constant 0 : index
    %18 = vector.load %arg18[%c9, %c0_15, %c0_16] : memref<10x10x32xf32, #tpu.memory_space<vmem>>, vector<1x10x32xf32>
    tpu.vector_store %arg18[%c9, %c0_15, %c0_16], %15 {strides = array<i32>} : memref<10x10x32xf32, #tpu.memory_space<vmem>>, vector<1x10x32xf32>,
    %c0_17 = arith.constant 0 : index
    %c0_18 = arith.constant 0 : index
    %c0_19 = arith.constant 0 : index
    %19 = vector.load %arg18[%c0_17, %c0_18, %c0_19] : memref<10x10x32xf32, #tpu.memory_space<vmem>>, vector<10x1x32xf32>
    tpu.vector_store %arg18[%c0_17, %c0_18, %c0_19], %16 {strides = array<i32>} : memref<10x10x32xf32, #tpu.memory_space<vmem>>, vector<10x1x32xf32>,
    %c0_20 = arith.constant 0 : index
    %c9_21 = arith.constant 9 : index
    %c0_22 = arith.constant 0 : index
    %20 = vector.load %arg18[%c0_20, %c9_21, %c0_22] : memref<10x10x32xf32, #tpu.memory_space<vmem>>, vector<10x1x32xf32>
    tpu.vector_store %arg18[%c0_20, %c9_21, %c0_22], %16 {strides = array<i32>} : memref<10x10x32xf32, #tpu.memory_space<vmem>>, vector<10x1x32xf32>,
    %21 = vector.shape_cast %10 : vector<64x32xf32> to vector<8x8x32xf32>
    %c1 = arith.constant 1 : index
    %c1_23 = arith.constant 1 : index
    %c0_24 = arith.constant 0 : index
    %22 = vector.load %arg18[%c1, %c1_23, %c0_24] : memref<10x10x32xf32, #tpu.memory_space<vmem>>, vector<8x8x32xf32>
    tpu.vector_store %arg18[%c1, %c1_23, %c0_24], %21 {strides = array<i32>} : memref<10x10x32xf32, #tpu.memory_space<vmem>>, vector<8x8x32xf32>,
    %c0_25 = arith.constant 0 : index
    %c0_26 = arith.constant 0 : index
    %c0_27 = arith.constant 0 : index
    %23 = vector.load %arg18[%c0_25, %c0_26, %c0_27] : memref<10x10x32xf32, #tpu.memory_space<vmem>>, vector<8x8x32xf32>
    %24 = vector.shape_cast %23 : vector<8x8x32xf32> to vector<64x32xf32>
    %c0_28 = arith.constant 0 : index
    %c1_29 = arith.constant 1 : index
    %c0_30 = arith.constant 0 : index
    %25 = vector.load %arg18[%c0_28, %c1_29, %c0_30] : memref<10x10x32xf32, #tpu.memory_space<vmem>>, vector<8x8x32xf32>
    %26 = vector.shape_cast %25 : vector<8x8x32xf32> to vector<64x32xf32>
    %c0_31 = arith.constant 0 : index
    %c2 = arith.constant 2 : index
    %c0_32 = arith.constant 0 : index
    %27 = vector.load %arg18[%c0_31, %c2, %c0_32] : memref<10x10x32xf32, #tpu.memory_space<vmem>>, vector<8x8x32xf32>
    %28 = vector.shape_cast %27 : vector<8x8x32xf32> to vector<64x32xf32>
    %c1_33 = arith.constant 1 : index
    %c0_34 = arith.constant 0 : index
    %c0_35 = arith.constant 0 : index
    %29 = vector.load %arg18[%c1_33, %c0_34, %c0_35] : memref<10x10x32xf32, #tpu.memory_space<vmem>>, vector<8x8x32xf32>
    %30 = vector.shape_cast %29 : vector<8x8x32xf32> to vector<64x32xf32>
    %c1_36 = arith.constant 1 : index
    %c1_37 = arith.constant 1 : index
    %c0_38 = arith.constant 0 : index
    %31 = vector.load %arg18[%c1_36, %c1_37, %c0_38] : memref<10x10x32xf32, #tpu.memory_space<vmem>>, vector<8x8x32xf32>
    %32 = vector.shape_cast %31 : vector<8x8x32xf32> to vector<64x32xf32>
    %c1_39 = arith.constant 1 : index
    %c2_40 = arith.constant 2 : index
    %c0_41 = arith.constant 0 : index
    %33 = vector.load %arg18[%c1_39, %c2_40, %c0_41] : memref<10x10x32xf32, #tpu.memory_space<vmem>>, vector<8x8x32xf32>
    %34 = vector.shape_cast %33 : vector<8x8x32xf32> to vector<64x32xf32>
    %c2_42 = arith.constant 2 : index
    %c0_43 = arith.constant 0 : index
    %c0_44 = arith.constant 0 : index
    %35 = vector.load %arg18[%c2_42, %c0_43, %c0_44] : memref<10x10x32xf32, #tpu.memory_space<vmem>>, vector<8x8x32xf32>
    %36 = vector.shape_cast %35 : vector<8x8x32xf32> to vector<64x32xf32>
    %c2_45 = arith.constant 2 : index
    %c1_46 = arith.constant 1 : index
    %c0_47 = arith.constant 0 : index
    %37 = vector.load %arg18[%c2_45, %c1_46, %c0_47] : memref<10x10x32xf32, #tpu.memory_space<vmem>>, vector<8x8x32xf32>
    %38 = vector.shape_cast %37 : vector<8x8x32xf32> to vector<64x32xf32>
    %c2_48 = arith.constant 2 : index
    %c2_49 = arith.constant 2 : index
    %c0_50 = arith.constant 0 : index
    %39 = vector.load %arg18[%c2_48, %c2_49, %c0_50] : memref<10x10x32xf32, #tpu.memory_space<vmem>>, vector<8x8x32xf32>
    %40 = vector.shape_cast %39 : vector<8x8x32xf32> to vector<64x32xf32>
    %41 = tpu.concatenate %24, %26, %28, %30, %32, %34, %36, %38, %40 in 1 : vector<64x32xf32>, vector<64x32xf32>, vector<64x32xf32>, vector<64x32xf32>, vector<64x32xf32>, vector<64x32xf32>, vector<64x32xf32>, vector<64x32xf32>, vector<64x32xf32> -> vector<64x288xf32>
    %42 = arith.truncf %41 : vector<64x288xf32> to vector<64x288xbf16>
    %c0_51 = arith.constant 0 : index
    %c0_52 = arith.constant 0 : index
    %43 = vector.load %arg5[%c0_51, %c0_52] : memref<288x16xbf16, #tpu.memory_space<vmem>>, vector<288x16xbf16>
    %cst_53 = arith.constant dense<0.000000e+00> : vector<64x16xf32>
    %44 = tpu.matmul %42, %43, %cst_53 {dimension_numbers = #tpu.dot_dimension_numbers<[1], [0], [0], [1], [0, 0, 1, 1], [], []>} : vector<64x288xbf16>, vector<288x16xbf16>, vector<64x16xf32> -> vector<64x16xf32>
    %c0_54 = arith.constant 0 : index
    %c0_55 = arith.constant 0 : index
    %45 = vector.load %arg6[%c0_54, %c0_55] : memref<1x16xf32, #tpu.memory_space<vmem>>, vector<1x16xf32>
    %46 = vector.broadcast %45 : vector<1x16xf32> to vector<64x16xf32>
    %47 = arith.addf %44, %46 : vector<64x16xf32>
    %cst_56 = arith.constant 0.000000e+00 : f32
    %48 = vector.broadcast %cst_56 : f32 to vector<64x16xf32>
    %49 = arith.maximumf %47, %48 : vector<64x16xf32>
    %50 = vector.extract_strided_slice %49 {offsets = [0, 0], sizes = [64, 8], strides = [1, 1]} : vector<64x16xf32> to vector<64x8xf32>
    %51 = vector.extract_strided_slice %49 {offsets = [0, 8], sizes = [64, 8], strides = [1, 1]} : vector<64x16xf32> to vector<64x8xf32>
    %52 = arith.truncf %50 : vector<64x8xf32> to vector<64x8xbf16>
    %cst_57 = arith.constant dense<0.000000e+00> : vector<8x8xf32>
    %53 = tpu.matmul %52, %52, %cst_57 {dimension_numbers = #tpu.dot_dimension_numbers<[0], [0], [1], [1], [0, 1, 1, 1], [], []>} : vector<64x8xbf16>, vector<64x8xbf16>, vector<8x8xf32> -> vector<8x8xf32>
    %cst_58 = arith.constant dense<0xFF800000> : vector<8xf32>
    %54 = vector.multi_reduction <maximumf>, %53, %cst_58 [1] : vector<8x8xf32> to vector<8xf32>
    %55 = vector.shape_cast %54 : vector<8xf32> to vector<8x1xf32>
    %56 = vector.broadcast %55 : vector<8x1xf32> to vector<8x8xf32>
    %57 = arith.subf %56, %53 : vector<8x8xf32>
    %cst_59 = arith.constant dense<0xFF800000> : vector<8xf32>
    %58 = vector.multi_reduction <maximumf>, %57, %cst_59 [1] : vector<8x8xf32> to vector<8xf32>
    %59 = vector.shape_cast %58 : vector<8xf32> to vector<8x1xf32>
    %60 = vector.broadcast %59 : vector<8x1xf32> to vector<8x8xf32>
    %61 = arith.subf %57, %60 : vector<8x8xf32>
    %62 = math.exp %61 : vector<8x8xf32>
    %cst_60 = arith.constant dense<0.000000e+00> : vector<8xf32>
    %63 = vector.multi_reduction <add>, %62, %cst_60 [1] : vector<8x8xf32> to vector<8xf32>
    %64 = vector.shape_cast %63 : vector<8xf32> to vector<8x1xf32>
    %65 = tpu.reciprocal %64 {approx = true} : vector<8x1xf32> -> vector<8x1xf32>
    %66 = vector.broadcast %65 : vector<8x1xf32> to vector<8x8xf32>
    %67 = arith.mulf %62, %66 : vector<8x8xf32>
    %68 = arith.truncf %67 : vector<8x8xf32> to vector<8x8xbf16>
    %cst_61 = arith.constant dense<0.000000e+00> : vector<64x8xf32>
    %69 = tpu.matmul %52, %68, %cst_61 {dimension_numbers = #tpu.dot_dimension_numbers<[1], [1], [0], [0], [0, 0, 1, 0], [], []>} : vector<64x8xbf16>, vector<8x8xbf16>, vector<64x8xf32> -> vector<64x8xf32>
    %70 = arith.truncf %51 : vector<64x8xf32> to vector<64x8xbf16>
    %c0_62 = arith.constant 0 : index
    %c0_63 = arith.constant 0 : index
    %71 = vector.load %arg7[%c0_62, %c0_63] : memref<8x9xbf16, #tpu.memory_space<vmem>>, vector<8x9xbf16>
    %cst_64 = arith.constant dense<0.000000e+00> : vector<64x9xf32>
    %72 = tpu.matmul %70, %71, %cst_64 {dimension_numbers = #tpu.dot_dimension_numbers<[1], [0], [0], [1], [0, 0, 1, 1], [], []>} : vector<64x8xbf16>, vector<8x9xbf16>, vector<64x9xf32> -> vector<64x9xf32>
    %c0_65 = arith.constant 0 : index
    %c0_66 = arith.constant 0 : index
    %73 = vector.load %arg8[%c0_65, %c0_66] : memref<1x9xf32, #tpu.memory_space<vmem>>, vector<1x9xf32>
    %74 = vector.broadcast %73 : vector<1x9xf32> to vector<64x9xf32>
    %75 = arith.addf %72, %74 : vector<64x9xf32>
    %76 = vector.extract_strided_slice %75 {offsets = [0, 0], sizes = [64, 1], strides = [1, 1]} : vector<64x9xf32> to vector<64x1xf32>
    %77 = vector.extract_strided_slice %75 {offsets = [0, 1], sizes = [64, 8], strides = [1, 1]} : vector<64x9xf32> to vector<64x8xf32>
    %c0_67 = arith.constant 0 : index
    %c0_68 = arith.constant 0 : index
    %78 = vector.load %arg9[%c0_67, %c0_68] : memref<8x1xbf16, #tpu.memory_space<vmem>>, vector<8x1xbf16>
    %cst_69 = arith.constant dense<0.000000e+00> : vector<1x64xf32>
    %79 = tpu.matmul %78, %70, %cst_69 {dimension_numbers = #tpu.dot_dimension_numbers<[0], [1], [1], [0], [0, 1, 1, 0], [], []>} : vector<8x1xbf16>, vector<64x8xbf16>, vector<1x64xf32> -> vector<1x64xf32>
    %c0_70 = arith.constant 0 : index
    %c0_71 = arith.constant 0 : index
    %80 = vector.load %arg10[%c0_70, %c0_71] : memref<1x1xf32, #tpu.memory_space<vmem>>, vector<1x1xf32>
    %81 = vector.broadcast %80 : vector<1x1xf32> to vector<1x64xf32>
    %82 = arith.addf %79, %81 : vector<1x64xf32>
    %83 = vector.broadcast %76 : vector<64x1xf32> to vector<64x64xf32>
    %84 = vector.broadcast %82 : vector<1x64xf32> to vector<64x64xf32>
    %85 = arith.mulf %83, %84 : vector<64x64xf32>
    %cst_72 = arith.constant dense<0xFF800000> : vector<64xf32>
    %86 = vector.multi_reduction <maximumf>, %85, %cst_72 [1] : vector<64x64xf32> to vector<64xf32>
    %87 = vector.shape_cast %86 : vector<64xf32> to vector<64x1xf32>
    %88 = vector.broadcast %87 : vector<64x1xf32> to vector<64x64xf32>
    %89 = arith.subf %85, %88 : vector<64x64xf32>
    %90 = math.exp %89 : vector<64x64xf32>
    %cst_73 = arith.constant dense<0.000000e+00> : vector<64xf32>
    %91 = vector.multi_reduction <add>, %90, %cst_73 [1] : vector<64x64xf32> to vector<64xf32>
    %92 = vector.shape_cast %91 : vector<64xf32> to vector<64x1xf32>
    %93 = tpu.reciprocal %92 {approx = true} : vector<64x1xf32> -> vector<64x1xf32>
    %94 = vector.broadcast %93 : vector<64x1xf32> to vector<64x64xf32>
    %95 = arith.mulf %90, %94 : vector<64x64xf32>
    %96 = arith.truncf %95 : vector<64x64xf32> to vector<64x64xbf16>
    %97 = arith.truncf %77 : vector<64x8xf32> to vector<64x8xbf16>
    %cst_74 = arith.constant dense<0.000000e+00> : vector<64x8xf32>
    %98 = tpu.matmul %96, %97, %cst_74 {dimension_numbers = #tpu.dot_dimension_numbers<[1], [0], [0], [1], [0, 0, 1, 1], [], []>} : vector<64x64xbf16>, vector<64x8xbf16>, vector<64x8xf32> -> vector<64x8xf32>
    %99 = tpu.concatenate %69, %98 in 1 : vector<64x8xf32>, vector<64x8xf32> -> vector<64x16xf32>
    %c0_75 = arith.constant 0 : index
    %c0_76 = arith.constant 0 : index
    %100 = vector.load %arg2[%c0_75, %c0_76] : memref<1x16xf32, #tpu.memory_space<vmem>>, vector<1x16xf32>
    %101 = vector.broadcast %100 : vector<1x16xf32> to vector<64x16xf32>
    %102 = arith.mulf %101, %99 : vector<64x16xf32>
    %103 = arith.addf %102, %49 : vector<64x16xf32>
    %cst_77 = arith.constant 0.000000e+00 : f32
    %104 = vector.broadcast %cst_77 : f32 to vector<1x10x16xf32>
    %cst_78 = arith.constant 0.000000e+00 : f32
    %105 = vector.broadcast %cst_78 : f32 to vector<10x1x16xf32>
    %c0_79 = arith.constant 0 : index
    %c0_80 = arith.constant 0 : index
    %c0_81 = arith.constant 0 : index
    %106 = vector.load %arg19[%c0_79, %c0_80, %c0_81] : memref<10x10x16xf32, #tpu.memory_space<vmem>>, vector<1x10x16xf32>
    tpu.vector_store %arg19[%c0_79, %c0_80, %c0_81], %104 {strides = array<i32>} : memref<10x10x16xf32, #tpu.memory_space<vmem>>, vector<1x10x16xf32>,
    %c9_82 = arith.constant 9 : index
    %c0_83 = arith.constant 0 : index
    %c0_84 = arith.constant 0 : index
    %107 = vector.load %arg19[%c9_82, %c0_83, %c0_84] : memref<10x10x16xf32, #tpu.memory_space<vmem>>, vector<1x10x16xf32>
    tpu.vector_store %arg19[%c9_82, %c0_83, %c0_84], %104 {strides = array<i32>} : memref<10x10x16xf32, #tpu.memory_space<vmem>>, vector<1x10x16xf32>,
    %c0_85 = arith.constant 0 : index
    %c0_86 = arith.constant 0 : index
    %c0_87 = arith.constant 0 : index
    %108 = vector.load %arg19[%c0_85, %c0_86, %c0_87] : memref<10x10x16xf32, #tpu.memory_space<vmem>>, vector<10x1x16xf32>
    tpu.vector_store %arg19[%c0_85, %c0_86, %c0_87], %105 {strides = array<i32>} : memref<10x10x16xf32, #tpu.memory_space<vmem>>, vector<10x1x16xf32>,
    %c0_88 = arith.constant 0 : index
    %c9_89 = arith.constant 9 : index
    %c0_90 = arith.constant 0 : index
    %109 = vector.load %arg19[%c0_88, %c9_89, %c0_90] : memref<10x10x16xf32, #tpu.memory_space<vmem>>, vector<10x1x16xf32>
    tpu.vector_store %arg19[%c0_88, %c9_89, %c0_90], %105 {strides = array<i32>} : memref<10x10x16xf32, #tpu.memory_space<vmem>>, vector<10x1x16xf32>,
    %110 = vector.shape_cast %103 : vector<64x16xf32> to vector<8x8x16xf32>
    %c1_91 = arith.constant 1 : index
    %c1_92 = arith.constant 1 : index
    %c0_93 = arith.constant 0 : index
    %111 = vector.load %arg19[%c1_91, %c1_92, %c0_93] : memref<10x10x16xf32, #tpu.memory_space<vmem>>, vector<8x8x16xf32>
    tpu.vector_store %arg19[%c1_91, %c1_92, %c0_93], %110 {strides = array<i32>} : memref<10x10x16xf32, #tpu.memory_space<vmem>>, vector<8x8x16xf32>,
    %c0_94 = arith.constant 0 : index
    %c0_95 = arith.constant 0 : index
    %c0_96 = arith.constant 0 : index
    %112 = vector.load %arg19[%c0_94, %c0_95, %c0_96] : memref<10x10x16xf32, #tpu.memory_space<vmem>>, vector<8x8x16xf32>
    %113 = vector.shape_cast %112 : vector<8x8x16xf32> to vector<64x16xf32>
    %c0_97 = arith.constant 0 : index
    %c1_98 = arith.constant 1 : index
    %c0_99 = arith.constant 0 : index
    %114 = vector.load %arg19[%c0_97, %c1_98, %c0_99] : memref<10x10x16xf32, #tpu.memory_space<vmem>>, vector<8x8x16xf32>
    %115 = vector.shape_cast %114 : vector<8x8x16xf32> to vector<64x16xf32>
    %c0_100 = arith.constant 0 : index
    %c2_101 = arith.constant 2 : index
    %c0_102 = arith.constant 0 : index
    %116 = vector.load %arg19[%c0_100, %c2_101, %c0_102] : memref<10x10x16xf32, #tpu.memory_space<vmem>>, vector<8x8x16xf32>
    %117 = vector.shape_cast %116 : vector<8x8x16xf32> to vector<64x16xf32>
    %c1_103 = arith.constant 1 : index
    %c0_104 = arith.constant 0 : index
    %c0_105 = arith.constant 0 : index
    %118 = vector.load %arg19[%c1_103, %c0_104, %c0_105] : memref<10x10x16xf32, #tpu.memory_space<vmem>>, vector<8x8x16xf32>
    %119 = vector.shape_cast %118 : vector<8x8x16xf32> to vector<64x16xf32>
    %c1_106 = arith.constant 1 : index
    %c1_107 = arith.constant 1 : index
    %c0_108 = arith.constant 0 : index
    %120 = vector.load %arg19[%c1_106, %c1_107, %c0_108] : memref<10x10x16xf32, #tpu.memory_space<vmem>>, vector<8x8x16xf32>
    %121 = vector.shape_cast %120 : vector<8x8x16xf32> to vector<64x16xf32>
    %c1_109 = arith.constant 1 : index
    %c2_110 = arith.constant 2 : index
    %c0_111 = arith.constant 0 : index
    %122 = vector.load %arg19[%c1_109, %c2_110, %c0_111] : memref<10x10x16xf32, #tpu.memory_space<vmem>>, vector<8x8x16xf32>
    %123 = vector.shape_cast %122 : vector<8x8x16xf32> to vector<64x16xf32>
    %c2_112 = arith.constant 2 : index
    %c0_113 = arith.constant 0 : index
    %c0_114 = arith.constant 0 : index
    %124 = vector.load %arg19[%c2_112, %c0_113, %c0_114] : memref<10x10x16xf32, #tpu.memory_space<vmem>>, vector<8x8x16xf32>
    %125 = vector.shape_cast %124 : vector<8x8x16xf32> to vector<64x16xf32>
    %c2_115 = arith.constant 2 : index
    %c1_116 = arith.constant 1 : index
    %c0_117 = arith.constant 0 : index
    %126 = vector.load %arg19[%c2_115, %c1_116, %c0_117] : memref<10x10x16xf32, #tpu.memory_space<vmem>>, vector<8x8x16xf32>
    %127 = vector.shape_cast %126 : vector<8x8x16xf32> to vector<64x16xf32>
    %c2_118 = arith.constant 2 : index
    %c2_119 = arith.constant 2 : index
    %c0_120 = arith.constant 0 : index
    %128 = vector.load %arg19[%c2_118, %c2_119, %c0_120] : memref<10x10x16xf32, #tpu.memory_space<vmem>>, vector<8x8x16xf32>
    %129 = vector.shape_cast %128 : vector<8x8x16xf32> to vector<64x16xf32>
    %130 = tpu.concatenate %113, %115, %117, %119, %121, %123, %125, %127, %129 in 1 : vector<64x16xf32>, vector<64x16xf32>, vector<64x16xf32>, vector<64x16xf32>, vector<64x16xf32>, vector<64x16xf32>, vector<64x16xf32>, vector<64x16xf32>, vector<64x16xf32> -> vector<64x144xf32>
    %131 = arith.truncf %130 : vector<64x144xf32> to vector<64x144xbf16>
    %c0_121 = arith.constant 0 : index
    %c0_122 = arith.constant 0 : index
    %132 = vector.load %arg11[%c0_121, %c0_122] : memref<144x64xbf16, #tpu.memory_space<vmem>>, vector<144x64xbf16>
    %cst_123 = arith.constant dense<0.000000e+00> : vector<64x64xf32>
    %133 = tpu.matmul %131, %132, %cst_123 {dimension_numbers = #tpu.dot_dimension_numbers<[1], [0], [0], [1], [0, 0, 1, 1], [], []>} : vector<64x144xbf16>, vector<144x64xbf16>, vector<64x64xf32> -> vector<64x64xf32>
    %c0_124 = arith.constant 0 : index
    %c0_125 = arith.constant 0 : index
    %134 = vector.load %arg12[%c0_124, %c0_125] : memref<1x64xf32, #tpu.memory_space<vmem>>, vector<1x64xf32>
    %135 = vector.broadcast %134 : vector<1x64xf32> to vector<64x64xf32>
    %136 = arith.addf %133, %135 : vector<64x64xf32>
    %cst_126 = arith.constant 0.000000e+00 : f32
    %137 = vector.broadcast %cst_126 : f32 to vector<64x64xf32>
    %138 = arith.maximumf %136, %137 : vector<64x64xf32>
    %139 = vector.extract_strided_slice %138 {offsets = [0, 0], sizes = [64, 32], strides = [1, 1]} : vector<64x64xf32> to vector<64x32xf32>
    %140 = vector.extract_strided_slice %138 {offsets = [0, 32], sizes = [64, 32], strides = [1, 1]} : vector<64x64xf32> to vector<64x32xf32>
    %141 = arith.addf %139, %140 : vector<64x32xf32>
    %cst_127 = arith.constant dense<0.000000e+00> : vector<32xf32>
    %142 = vector.multi_reduction <add>, %141, %cst_127 [0] : vector<64x32xf32> to vector<32xf32>
    %143 = vector.shape_cast %142 : vector<32xf32> to vector<1x32xf32>
    %144 = tpu.concatenate %14, %143 in 1 : vector<1x32xf32>, vector<1x32xf32> -> vector<1x64xf32>
    %c0_128 = arith.constant 0 : index
    %c0_129 = arith.constant 0 : index
    %145 = vector.load %arg13[%c0_128, %c0_129] : memref<64x32xf32, #tpu.memory_space<vmem>>, vector<64x32xf32>
    %cst_130 = arith.constant dense<0.000000e+00> : vector<1x32xf32>
    %146 = tpu.matmul %144, %145, %cst_130 {dimension_numbers = #tpu.dot_dimension_numbers<[1], [0], [0], [1], [0, 0, 1, 1], [], []>} : vector<1x64xf32>, vector<64x32xf32>, vector<1x32xf32> -> vector<1x32xf32>
    %c0_131 = arith.constant 0 : index
    %c0_132 = arith.constant 0 : index
    %147 = vector.load %arg14[%c0_131, %c0_132] : memref<1x32xf32, #tpu.memory_space<vmem>>, vector<1x32xf32>
    %148 = arith.addf %146, %147 : vector<1x32xf32>
    %cst_133 = arith.constant 0.000000e+00 : f32
    %149 = vector.broadcast %cst_133 : f32 to vector<1x32xf32>
    %150 = arith.maximumf %148, %149 : vector<1x32xf32>
    %c0_134 = arith.constant 0 : index
    %c0_135 = arith.constant 0 : index
    %151 = vector.load %arg15[%c0_134, %c0_135] : memref<32x4xf32, #tpu.memory_space<vmem>>, vector<32x4xf32>
    %cst_136 = arith.constant dense<0.000000e+00> : vector<1x4xf32>
    %152 = tpu.matmul %150, %151, %cst_136 {dimension_numbers = #tpu.dot_dimension_numbers<[1], [0], [0], [1], [0, 0, 1, 1], [], []>} : vector<1x32xf32>, vector<32x4xf32>, vector<1x4xf32> -> vector<1x4xf32>
    %c0_137 = arith.constant 0 : index
    %c0_138 = arith.constant 0 : index
    %153 = vector.load %arg16[%c0_137, %c0_138] : memref<1x4xf32, #tpu.memory_space<vmem>>, vector<1x4xf32>
    %154 = arith.addf %152, %153 : vector<1x4xf32>
    %c0_139 = arith.constant 0 : index
    %c0_140 = arith.constant 0 : index
    %c0_141 = arith.constant 0 : index
    %155 = vector.load %arg17[%c0_139, %c0_140, %c0_141] : memref<1x1x4xf32, #tpu.memory_space<vmem>>, vector<1x1x4xf32>
    %156 = vector.shape_cast %155 : vector<1x1x4xf32> to vector<1x4xf32>
    %157 = vector.shape_cast %154 : vector<1x4xf32> to vector<1x1x4xf32>
    tpu.vector_store %arg17[%c0_139, %c0_140, %c0_141], %157 {strides = array<i32>} : memref<1x1x4xf32, #tpu.memory_space<vmem>>, vector<1x1x4xf32>,
    return
  }
  func.func @transform_0(%arg0: i32) -> (i32, i32, i32, i32) {
    %c0_i32 = arith.constant 0 : i32
    %c0_i32_0 = arith.constant 0 : i32
    %c0_i32_1 = arith.constant 0 : i32
    %c0_i32_2 = arith.constant 0 : i32
    return %arg0, %c0_i32, %c0_i32_0, %c0_i32_1 : i32, i32, i32, i32
  }
  func.func @transform_1(%arg0: i32) -> (i32, i32) {
    %c0_i32 = arith.constant 0 : i32
    %c0_i32_0 = arith.constant 0 : i32
    %c0_i32_1 = arith.constant 0 : i32
    return %c0_i32, %c0_i32_0 : i32, i32
  }
  func.func @transform_2(%arg0: i32) -> (i32, i32) {
    %c0_i32 = arith.constant 0 : i32
    %c0_i32_0 = arith.constant 0 : i32
    %c0_i32_1 = arith.constant 0 : i32
    return %c0_i32, %c0_i32_0 : i32, i32
  }
  func.func @transform_3(%arg0: i32) -> (i32, i32) {
    %c0_i32 = arith.constant 0 : i32
    %c0_i32_0 = arith.constant 0 : i32
    %c0_i32_1 = arith.constant 0 : i32
    return %c0_i32, %c0_i32_0 : i32, i32
  }
  func.func @transform_4(%arg0: i32) -> (i32, i32) {
    %c0_i32 = arith.constant 0 : i32
    %c0_i32_0 = arith.constant 0 : i32
    %c0_i32_1 = arith.constant 0 : i32
    return %c0_i32, %c0_i32_0 : i32, i32
  }
  func.func @transform_5(%arg0: i32) -> (i32, i32) {
    %c0_i32 = arith.constant 0 : i32
    %c0_i32_0 = arith.constant 0 : i32
    %c0_i32_1 = arith.constant 0 : i32
    return %c0_i32, %c0_i32_0 : i32, i32
  }
  func.func @transform_6(%arg0: i32) -> (i32, i32) {
    %c0_i32 = arith.constant 0 : i32
    %c0_i32_0 = arith.constant 0 : i32
    %c0_i32_1 = arith.constant 0 : i32
    return %c0_i32, %c0_i32_0 : i32, i32
  }
  func.func @transform_7(%arg0: i32) -> (i32, i32) {
    %c0_i32 = arith.constant 0 : i32
    %c0_i32_0 = arith.constant 0 : i32
    %c0_i32_1 = arith.constant 0 : i32
    return %c0_i32, %c0_i32_0 : i32, i32
  }
  func.func @transform_8(%arg0: i32) -> (i32, i32) {
    %c0_i32 = arith.constant 0 : i32
    %c0_i32_0 = arith.constant 0 : i32
    %c0_i32_1 = arith.constant 0 : i32
    return %c0_i32, %c0_i32_0 : i32, i32
  }
  func.func @transform_9(%arg0: i32) -> (i32, i32) {
    %c0_i32 = arith.constant 0 : i32
    %c0_i32_0 = arith.constant 0 : i32
    %c0_i32_1 = arith.constant 0 : i32
    return %c0_i32, %c0_i32_0 : i32, i32
  }
  func.func @transform_10(%arg0: i32) -> (i32, i32) {
    %c0_i32 = arith.constant 0 : i32
    %c0_i32_0 = arith.constant 0 : i32
    %c0_i32_1 = arith.constant 0 : i32
    return %c0_i32, %c0_i32_0 : i32, i32
  }
  func.func @transform_11(%arg0: i32) -> (i32, i32) {
    %c0_i32 = arith.constant 0 : i32
    %c0_i32_0 = arith.constant 0 : i32
    %c0_i32_1 = arith.constant 0 : i32
    return %c0_i32, %c0_i32_0 : i32, i32
  }
  func.func @transform_12(%arg0: i32) -> (i32, i32) {
    %c0_i32 = arith.constant 0 : i32
    %c0_i32_0 = arith.constant 0 : i32
    %c0_i32_1 = arith.constant 0 : i32
    return %c0_i32, %c0_i32_0 : i32, i32
  }
  func.func @transform_13(%arg0: i32) -> (i32, i32) {
    %c0_i32 = arith.constant 0 : i32
    %c0_i32_0 = arith.constant 0 : i32
    %c0_i32_1 = arith.constant 0 : i32
    return %c0_i32, %c0_i32_0 : i32, i32
  }
  func.func @transform_14(%arg0: i32) -> (i32, i32) {
    %c0_i32 = arith.constant 0 : i32
    %c0_i32_0 = arith.constant 0 : i32
    %c0_i32_1 = arith.constant 0 : i32
    return %c0_i32, %c0_i32_0 : i32, i32
  }
  func.func @transform_15(%arg0: i32) -> (i32, i32) {
    %c0_i32 = arith.constant 0 : i32
    %c0_i32_0 = arith.constant 0 : i32
    %c0_i32_1 = arith.constant 0 : i32
    return %c0_i32, %c0_i32_0 : i32, i32
  }
  func.func @transform_16(%arg0: i32) -> (i32, i32, i32) {
    %c0_i32 = arith.constant 0 : i32
    %c0_i32_0 = arith.constant 0 : i32
    %c0_i32_1 = arith.constant 0 : i32
    return %arg0, %c0_i32, %c0_i32_0 : i32, i32, i32
  }
}

</mosaic_0001>

<bundles_post_ra>
// kernel: tpu_custom_call.1
= control target key start
LH: loop header
LB: loop body
LE: loop exit
PB: predicated region body
PF: predicated region fallthrough
CT: control target
= control target key end

     0   :  { %s4612_s0 = inlined_call_operand.vmem [shape: f32[2,8,8,3], index: 0, kind: input, shape index: {}]   ;;  %s4613_s1 = inlined_call_operand.vmem [shape: f32[1,16], index: 1, kind: input, shape index: {}]   ;;  %s4614_s2 = inlined_call_operand.vmem [shape: bf16[3,32], index: 2, kind: input, shape index: {}]   ;;  %s4615_s3 = inlined_call_operand.vmem [shape: f32[1,32], index: 3, kind: input, shape index: {}]   ;;  %s4616_s4 = inlined_call_operand.vmem [shape: bf16[288,16], index: 4, kind: input, shape index: {}]   ;;  %s4617_s5 = inlined_call_operand.vmem [shape: f32[1,16], index: 5, kind: input, shape index: {}]   ;;  %s4618_s6 = inlined_call_operand.vmem [shape: bf16[8,9], index: 6, kind: input, shape index: {}]   ;;  %s4619_s7 = inlined_call_operand.vmem [shape: f32[1,9], index: 7, kind: input, shape index: {}]   ;;  %s4620_s8 = inlined_call_operand.vmem [shape: bf16[8,1], index: 8, kind: input, shape index: {}]   ;;  %s4621_s9 = inlined_call_operand.<no memory space> [shape: f32[1,1], index: 9, kind: input, shape index: {}]   ;;  %s4622_s10 = inlined_call_operand.vmem [shape: bf16[144,64], index: 10, kind: input, shape index: {}]   ;;  %s4623_s11 = inlined_call_operand.vmem [shape: f32[1,64], index: 11, kind: input, shape index: {}]   ;;  %s4624_s12 = inlined_call_operand.vmem [shape: f32[64,32], index: 12, kind: input, shape index: {}]   ;;  %s4625_s13 = inlined_call_operand.vmem [shape: f32[1,32], index: 13, kind: input, shape index: {}]   ;;  %s4626_s14 = inlined_call_operand.vmem [shape: f32[32,4], index: 14, kind: input, shape index: {}]   ;;  %s4627_s15 = inlined_call_operand.vmem [shape: f32[1,4], index: 15, kind: input, shape index: {}]   ;;  %s4628_s16 = inlined_call_operand.hbm [shape: f32[2,1,4], index: 16, kind: output, shape index: {}]  }
   0x1   :  { %4631 = sst [smem:[#allocation10_spill]] %s4612_s0  ;;  %v21_v0 = vstv %s4621_s9 }
   0x2   :  { %4632 = sst [smem:[#allocation11_spill]] %s4613_s1  ;;  %22 = vst [vmem:[#allocation4] sm:$0x1] %v21_v0 }
   0x3   :  { %4633 = sst [smem:[#allocation12_spill]] %s4614_s2 }
   0x4   :  { %23 = vsyncpa [#allocation6], 0 }
   0x5   :  { %25 = vsyncpa [#allocation6 + $0x1], 0  ;;  %s3661_s23 = smov 0   ;;  %s3663_s24 = smov 0  }
   0x6   :  { %s3665_s25 = smov 0   ;;  %s3667_s26 = smov 0  }
   0x7 LB: > { %4634 = sst [smem:[#allocation8_spill]] %s3551_s25  ;;  %s3682_s9 = sadd.s32 4294967295, %s3555_s26   ;;  %s3555_s26 = sphi %s3667_s26, %s4646_s26   ;;  %s3551_s25 = sphi %s3665_s25, %s4643_s25   ;;  %s3547_s24 = sphi %s3663_s24, %s4645_s24   ;;  %s3543_s23 = sphi %s3661_s23, %s4644_s23  }
   0x8   : > { %s2819_s27 = sadd.s32 4294967294, %s3555_s26   ;;  %s3686_s28 = sadd.s32 1, %s3555_s26  }
   0x9   : > { %s379_s29 = sadd.s32 1, %s3551_s25  ;;  %s376_s30 = ssub.s32 %s3555_s26, %s3686_s28 }
   0xa   : > { %p389_p0 = scmp.ne.s32.totalorder %s3551_s25, %s3547_s24  ;;  %p377_p1 = scmp.eq.s32.totalorder %s376_s30, 0 }
   0xb   : > { %p390_p2 = scmp.eq.s32.totalorder %s3682_s9, 1  ;;  %p395_p3 = scmp.ne.s32.totalorder %s3547_s24, %s3543_s23 }
   0xc   : > { %p396_p4 = scmp.eq.s32.totalorder %s2819_s27, 1  ;;  %p2822_p7 = scmp.ge.s32.totalorder %s3555_s26, 1 }
   0xd   : > { %s3697_s0 = scalar_select %p377_p1, %s3551_s25, %s379_s29  }
   0xe   : > { %p3699_p5 = por %p390_p2, %p389_p0  ;;  %p3703_p6 = por %p396_p4, %p395_p3 }
   0xf   : > { %4635 = sst [smem:[#allocation9_spill]] %s3697_s0  ;;  %p467_p8 = scmp.lt.s32.totalorder %s3555_s26, 3 }
  0x11   : > { %p468_p9 = pnand %p2822_p7, %p467_p8 }
  0x12   : > { %s4638_s2 = sld [smem:[#allocation12_spill]] (!%p468_p9)  ;;  %vm555_vm0 = vcmask (!%p468_p9), 1040384   ;;  %vm556_vm1 = vcmask (!%p468_p9), 1041408   ;;  %p516_p10 = scmp.lt.s32.totalorder (!%p468_p9), %s3682_s9, 1  ;;  %v3557_v2 = vmov (!%p468_p9), 65535   ;;  %vm542_vm2 = vcmask (!%p468_p9), 23552  }
  0x13   : > { %471 = sbr.rel (%p468_p9) target bundleno = 3599 (0xe0f), region = 84  ;;  %v557_v3 = vsel (!%p468_p9), %vm555_vm0, 4294967295, %v3557_v2  ;;  %s4639_s30 = sld [smem:[#allocation10_spill]] (!%p468_p9)  ;;  %vm635_vm3 = vcmask (!%p468_p9), 261120   ;;  %vm659_vm4 = vcmask (!%p468_p9), 254976   ;;  %vm664_vm5 = vcmask (!%p468_p9), 253952  }
  0x14   : > { %v558_v4 = vsel (!%p468_p9), %vm556_vm1, %v557_v3, 0  ;;  %v3558_v18 = vmov (!%p468_p9), 0.0   ;;  %v3430_v19 = vld [vmem:[%s4616_s4 + $0x80] sm:$0xff] (!%p468_p9)   ;;  %v3431_v20 = vld [vmem:[%s4616_s4 + $0x88] sm:$0xff] (!%p468_p9)   ;;  %v3436_v25 = vld [vmem:[%s4616_s4 + $0x50] sm:$0xff] (!%p468_p9)   ;;  %s3559_s20 = smov (!%p468_p9), 64  }
  0x15   : > { %658 = vst.msk [vmem:[#allocation2] sm:$0xff] (!%p468_p9), %vm635_vm3, %v3558_v18  ;;  %662 = vst.msk [vmem:[#allocation2 + $0x90] sm:$0xff] (!%p468_p9), %vm635_vm3, %v3558_v18  ;;  %v3432_v21 = vld [vmem:[%s4616_s4 + $0x40] sm:$0xff] (!%p468_p9)   ;;  %v3434_v23 = vld [vmem:[%s4616_s4 + $0x48] sm:$0xff] (!%p468_p9)   ;;  %s3561_s25 = smov (!%p468_p9), 96   ;;  %vm967_vm6 = vcmask (!%p468_p9), 523264  }
  0x16   : > { %660 = vst.msk [vmem:[#allocation2 + $0x8] sm:$0x3] (!%p468_p9), %vm659_vm4, %v3558_v18  ;;  %663 = vst.msk [vmem:[#allocation2 + $0x98] sm:$0x3] (!%p468_p9), %vm659_vm4, %v3558_v18  ;;  %v3433_v22 = vld [vmem:[%s4616_s4] sm:$0xff] (!%p468_p9)   ;;  %2894 = vmatprep.subr.bf16.mxu1 (!%p468_p9), %v3432_v21  ;;  %v3435_v24 = vld [vmem:[%s4616_s4 + $0x8] sm:$0xff] (!%p468_p9)  }
  0x17   : > { %676 = vst.msk [vmem:[#allocation2 + $0x19] sm:$0x1] (!%p468_p9), %vm664_vm5, %v3558_v18  ;;  %666 = vst.msk [vmem:[#allocation2 + $0x10] sm:$0x1] (!%p468_p9), %vm664_vm5, %v3558_v18  ;;  %2895 = vmatpush3.bf16.msra.mxu1 (!%p468_p9), %v3433_v22  ;;  %v3437_v26 = vld [vmem:[%s4616_s4 + $0x10] sm:$0xff] (!%p468_p9)   ;;  %v3438_v27 = vld [vmem:[%s4616_s4 + $0x58] sm:$0xff] (!%p468_p9)  }
  0x18   : > { %v534_v1 = vld [vmem:[%s4638_s2] sm:$0x3] (!%p468_p9)  ;;  %667 = vst.msk [vmem:[#allocation2 + $0x20] sm:$0x1] (!%p468_p9), %vm664_vm5, %v3558_v18  ;;  %668 = vst.msk [vmem:[#allocation2 + $0x30] sm:$0x1] (!%p468_p9), %vm664_vm5, %v3558_v18  ;;  %2896 = vmatprep.subr.bf16.mxu1 (!%p468_p9), %v3434_v23 }
  0x19   : > { %v560_v5 = vand.u32 (!%p468_p9), %v558_v4, %v534_v1  ;;  %669 = vst.msk [vmem:[#allocation2 + $0x40] sm:$0x1] (!%p468_p9), %vm664_vm5, %v3558_v18  ;;  %670 = vst.msk [vmem:[#allocation2 + $0x50] sm:$0x1] (!%p468_p9), %vm664_vm5, %v3558_v18  ;;  %v3439_v28 = vld [vmem:[%s4616_s4 + $0x18] sm:$0xff] (!%p468_p9)   ;;  %v3440_v40 = vld [vmem:[%s4616_s4 + $0x60] sm:$0xff] (!%p468_p9)  }
  0x1a   : > { %s517_s21 = scalar_select %p516_p10, %s3682_s9, 1  ;;  %671 = vst.msk [vmem:[#allocation2 + $0x60] sm:$0x1] %vm664_vm5, %v3558_v18  ;;  %672 = vst.msk [vmem:[#allocation2 + $0x70] sm:$0x1] %vm664_vm5, %v3558_v18  ;;  %v3441_v42 = vld [vmem:[%s4616_s4 + $0x20] sm:$0xff]  }
  0x1b   : > { %2982 = vmatprep.subr.bf16.mxu0 %v560_v5  ;;  %673 = vst.msk [vmem:[#allocation2 + $0x80] sm:$0x1] %vm664_vm5, %v3558_v18  ;;  %677 = vst.msk [vmem:[#allocation2 + $0x29] sm:$0x1] %vm664_vm5, %v3558_v18  ;;  %2897 = vmatpush3.bf16.msra.mxu1 %v3435_v24  ;;  %v2825_v29 = vld [vmem:[%s4615_s3] ss:$0 sm:$0xff] }
  0x1c   : > { %s2888_s22 = sshll.u32 %s517_s21, 6  ;;  %2983 = vmatpush3.bf16.msra.mxu0 %v560_v5  ;;  %678 = vst.msk [vmem:[#allocation2 + $0x39] sm:$0x1] %vm664_vm5, %v3558_v18  ;;  %679 = vst.msk [vmem:[#allocation2 + $0x49] sm:$0x1] %vm664_vm5, %v3558_v18  ;;  %2898 = vmatprep.subr.bf16.mxu1 %v3436_v25  ;;  %v3442_v47 = vld [vmem:[%s4616_s4 + $0x68] sm:$0xff]  }
  0x1d   : > { %s520_s0 = scalar_lea.vmem %s4639_s30, %s2888_s22  ;;  %680 = vst.msk [vmem:[#allocation2 + $0x59] sm:$0x1] %vm664_vm5, %v3558_v18  ;;  %681 = vst.msk [vmem:[#allocation2 + $0x69] sm:$0x1] %vm664_vm5, %v3558_v18  ;;  %2992 = vmatprep.subr.bf16.mxu0 %v3430_v19  ;;  %v3443_v51 = vld [vmem:[%s4616_s4 + $0x28] sm:$0xff]   ;;  %s3560_s2 = smov 32  }
  0x1e   : > { %v522_v6 = vld [vmem:[%s520_s0] sm:$0xff]  ;;  %v523_v7 = vld [vmem:[%s520_s0 + $0x8] sm:$0xff]  ;;  %v524_v8 = vld [vmem:[%s520_s0 + $0x10] sm:$0xff]  ;;  %682 = vst.msk [vmem:[#allocation2 + $0x79] sm:$0x1] %vm664_vm5, %v3558_v18  ;;  %vm976_vm7 = vcmask 785408  }
  0x1f   : > { %v530_v9 = vpack.c.bf16 %v523_v7, %v522_v6  ;;  %v525_v10 = vld [vmem:[%s520_s0 + $0x18] sm:$0xff]  ;;  %v526_v11 = vld [vmem:[%s520_s0 + $0x20] sm:$0xff]  ;;  %v527_v12 = vld [vmem:[%s520_s0 + $0x28] sm:$0xff]  ;;  %683 = vst.msk [vmem:[#allocation2 + $0x89] sm:$0x1] %vm664_vm5, %v3558_v18  ;;  %2899 = vmatpush3.bf16.msra.mxu1 %v3437_v26  ;;  %vm3562_vm8 = vmmov 0  }
  0x20   : > { %v531_v13 = vpack.c.bf16 %v525_v10, %v524_v8  ;;  %v532_v14 = vpack.c.bf16 %v527_v12, %v526_v11  ;;  %v528_v15 = vld [vmem:[%s520_s0 + $0x30] sm:$0xff]  ;;  %v529_v16 = vld [vmem:[%s520_s0 + $0x38] sm:$0xff]  ;;  %665 = vst.msk [vmem:[#allocation2] sm:$0x1] %vm664_vm5, %v3558_v18  ;;  %675 = vst.msk [vmem:[#allocation2 + $0x9] sm:$0x1] %vm664_vm5, %v3558_v18  ;;  %2900 = vmatprep.subr.bf16.mxu1 %v3438_v27 }
  0x21   : > { %2984 = vmatprep.mubr.msk.bf16.mxu0 %vm542_vm2, %v530_v9  ;;  %v533_v17 = vpack.c.bf16 %v529_v16, %v528_v15  ;;  %684 = vst.msk [vmem:[#allocation2 + $0x99] sm:$0x1] %vm664_vm5, %v3558_v18  ;;  %674 = vst.msk [vmem:[#allocation2 + $0x90] sm:$0x1] %vm664_vm5, %v3558_v18  ;;  %v702_v60 = vld [vmem:[#allocation2 + $0x1] sm:$0xff]  ;;  %v3444_v16 = vld [vmem:[%s4616_s4 + $0x70] sm:$0xff]  }
  0x22   : > { %2985 = vmatmul.mubr.msk.bf16.vlgmr.msra.gmra.mrb[0].mxu0 %vm542_vm2, %v531_v13  ;;  %v3446_v21 = vld [vmem:[%s4616_s4 + $0x78] sm:$0xff]   ;;  %s3563_s27 = smov 120   ;;  %vm1385_vm9 = vcmask 64512   ;;  %vm1514_vm10 = vcmask 1043456   ;;  %vm1957_vm11 = vcmask 130048   ;;  %vm1959_vm12 = vcmask 123904  }
  0x23   : > { %2988 = vmatprep.mubr.msk.bf16.mxu0 %vm542_vm2, %v532_v14  ;;  %2993 = vmatpush3.bf16.msra.mxu0 %v3430_v19  ;;  %v3447_v27 = vld [vmem:[%s4616_s4 + $0x38] sm:$0xff]   ;;  %1958 = vst.msk [vmem:[#allocation3] sm:$0xff] %vm1957_vm11, %v3558_v18  ;;  %1962 = vst.msk [vmem:[#allocation3 + $0x90] sm:$0xff] %vm1957_vm11, %v3558_v18  ;;  %vm1964_vm13 = vcmask 122880   ;;  %s3566_s29 = smov 8   ;;  %s4640_s1 = sld [smem:[#allocation11_spill]] }
  0x24   : > { %2994 = vmatprep.subr.bf16.mxu0 %v3431_v20  ;;  %2901 = vmatpush3.bf16.msra.mxu1 %v3439_v28  ;;  %1960 = vst.msk [vmem:[#allocation3 + $0x8] sm:$0x3] %vm1959_vm12, %v3558_v18  ;;  %1963 = vst.msk [vmem:[#allocation3 + $0x98] sm:$0x3] %vm1959_vm12, %v3558_v18  ;;  %s3567_s30 = smov 16   ;;  %s3569_s19 = smov 80  }
  0x25   : > { %2902 = vmatprep.subr.bf16.mxu1 %v3440_v40  ;;  %1975 = vst.msk [vmem:[#allocation3 + $0x9] sm:$0x1] %vm1964_vm13, %v3558_v18  ;;  %1976 = vst.msk [vmem:[#allocation3 + $0x19] sm:$0x1] %vm1964_vm13, %v3558_v18  ;;  %s3570_s21 = smov 112   ;;  %vm2307_vm14 = vcmask 392192  }
  0x26   : > { %1965 = vst.msk [vmem:[#allocation3] sm:$0x1] %vm1964_vm13, %v3558_v18  ;;  %1966 = vst.msk [vmem:[#allocation3 + $0x10] sm:$0x1] %vm1964_vm13, %v3558_v18  ;;  %vm2324_vm15 = vcmask 654336   ;;  %vm2341_vm0 = vcmask 916480  }
  0x27   : > { %2995 = vmatpush3.bf16.msra.mxu0 %v3431_v20  ;;  %v710_v59 = vld [vmem:[#allocation2 + $0x2] sm:$0xff]  ;;  %1967 = vst.msk [vmem:[#allocation3 + $0x20] sm:$0x1] %vm1964_vm13, %v3558_v18  ;;  %1968 = vst.msk [vmem:[#allocation3 + $0x30] sm:$0x1] %vm1964_vm13, %v3558_v18  ;;  %vm2749_vm1 = vcmask 24576  }
  0x28   : > { %3004 = vmatprep.subr.bf16.mxu0 %v3558_v18  ;;  %2903 = vmatpush3.bf16.msra.mxu1 %v3441_v42  ;;  %1969 = vst.msk [vmem:[#allocation3 + $0x40] sm:$0x1] %vm1964_vm13, %v3558_v18  ;;  %1970 = vst.msk [vmem:[#allocation3 + $0x50] sm:$0x1] %vm1964_vm13, %v3558_v18 }
  0x29   : > { %2904 = vmatprep.subr.bf16.mxu1 %v3442_v47  ;;  %1971 = vst.msk [vmem:[#allocation3 + $0x60] sm:$0x1] %vm1964_vm13, %v3558_v18  ;;  %1972 = vst.msk [vmem:[#allocation3 + $0x70] sm:$0x1] %vm1964_vm13, %v3558_v18 }
  0x2a   : > { %2989 = vmatmul.mubr.msk.bf16.gmra.mrb[4].mxu0 %vm542_vm2, %v533_v17  ;;  %v3445_v17 = vld [vmem:[%s4616_s4 + $0x30] sm:$0xff]   ;;  %1973 = vst.msk [vmem:[#allocation3 + $0x80] sm:$0x1] %vm1964_vm13, %v3558_v18  ;;  %1974 = vst.msk [vmem:[#allocation3 + $0x90] sm:$0x1] %vm1964_vm13, %v3558_v18 }
  0x2b   : > { %1977 = vst.msk [vmem:[#allocation3 + $0x29] sm:$0x1] %vm1964_vm13, %v3558_v18  ;;  %1978 = vst.msk [vmem:[#allocation3 + $0x39] sm:$0x1] %vm1964_vm13, %v3558_v18 }
  0x2c   : > { %2905 = vmatpush3.bf16.msra.mxu1 %v3443_v51  ;;  %1979 = vst.msk [vmem:[#allocation3 + $0x49] sm:$0x1] %vm1964_vm13, %v3558_v18  ;;  %1980 = vst.msk [vmem:[#allocation3 + $0x59] sm:$0x1] %vm1964_vm13, %v3558_v18 }
  0x2d   : > { %2906 = vmatprep.subr.bf16.mxu1 %v3444_v16  ;;  %1981 = vst.msk [vmem:[#allocation3 + $0x69] sm:$0x1] %vm1964_vm13, %v3558_v18  ;;  %1982 = vst.msk [vmem:[#allocation3 + $0x79] sm:$0x1] %vm1964_vm13, %v3558_v18 }
  0x2e   : > { %1983 = vst.msk [vmem:[#allocation3 + $0x89] sm:$0x1] %vm1964_vm13, %v3558_v18  ;;  %1984 = vst.msk [vmem:[#allocation3 + $0x99] sm:$0x1] %vm1964_vm13, %v3558_v18 }
  0x30   : > { %2907 = vmatpush3.bf16.msra.mxu1 %v3445_v17 }
  0x31   : > { %2908 = vmatprep.subr.bf16.mxu1 %v3446_v21 }
  0x34   : > { %2909 = vmatpush3.bf16.msra.mxu1 %v3447_v27 }
  0x35   : > { %3036 = vmatprep.subr.bf16.mxu1 %v3558_v18 }
  0xf5   : > { %v2986_v30 = vpop.f32.mrb[0].mxu0 }
  0xf6   : > { %v605_v31 = vadd.f32 %v2986_v30, %v2825_v29  ;;  %v596_v32 = vpop.f32.mrb[1].mxu0 }
  0xf7   : > { %v597_v33 = vadd.f32 %v2825_v29, %v596_v32  ;;  %v2987_v34 = vpop.f32.mrb[2].mxu0 }
  0xf8   : > { %v629_v35 = vmax.f32 %v605_v31, 0.0  ;;  %v608_v36 = vadd.f32 %v2987_v34, %v2825_v29  ;;  %v599_v37 = vpop.f32.mrb[3].mxu0 }
  0xf9   : > { %v627_v38 = vmax.f32 %v597_v33, 0.0  ;;  %v600_v39 = vadd.f32 %v2825_v29, %v599_v37 }
  0xfa   : > { %688 = vst.msk [vmem:[#allocation2 + $0x31] sm:$0xff] %vm635_vm3, %v629_v35  ;;  %v630_v41 = vmax.f32 %v608_v36, 0.0  ;;  %v639_v52 = vsel %vm635_vm3, %v629_v35, 0.0 }
  0xfb   : > { %686 = vst.msk [vmem:[#allocation2 + $0x11] sm:$0xff] %vm635_vm3, %v627_v38  ;;  %v628_v43 = vmax.f32 %v600_v39, 0.0  ;;  %v636_v44 = vsel %vm635_vm3, %v627_v38, 0.0  ;;  %v766_v39 = vld [vmem:[#allocation2 + $0x92] sm:$0xff] }
  0xfc   : > { %689 = vst.msk [vmem:[#allocation2 + $0x41] sm:$0xff] %vm635_vm3, %v630_v41  ;;  %v641_v61 = vsel %vm635_vm3, %v630_v41, 0.0 }
  0xfd   : > { %v637_v45 = vsel %vm635_vm3, %v628_v43, 0.0  ;;  %687 = vst.msk [vmem:[#allocation2 + $0x21] sm:$0xff] %vm635_vm3, %v628_v43  ;;  %v2990_v46 = vpop.f32.mrb[4].mxu0 }
  0xfe   : > { %v638_v48 = vadd.f32 %v637_v45, %v636_v44  ;;  %v621_v49 = vadd.f32 %v2990_v46, %v2825_v29  ;;  %v612_v50 = vpop.f32.mrb[5].mxu0 }
  0xff   : > { %v613_v53 = vadd.f32 %v2825_v29, %v612_v50  ;;  %v2991_v54 = vpop.f32.mrb[6].mxu0 }
 0x100   : > { %v640_v55 = vadd.f32 %v639_v52, %v638_v48  ;;  %v633_v56 = vmax.f32 %v621_v49, 0.0  ;;  %v624_v57 = vadd.f32 %v2991_v54, %v2825_v29  ;;  %v615_v58 = vpop.f32.mrb[7].mxu0 }
 0x101   : > { %v631_v62 = vmax.f32 %v613_v53, 0.0  ;;  %v616_v63 = vadd.f32 %v2825_v29, %v615_v58  ;;  %v3823_v8 = vld [vmem:[#allocation2 + $0x32] sm:$0xff] }
 0x102   : > { %692 = vst.msk [vmem:[#allocation2 + $0x71] sm:$0xff] %vm635_vm3, %v633_v56  ;;  %v642_v0 = vadd.f32 %v641_v61, %v640_v55  ;;  %v634_v1 = vmax.f32 %v624_v57, 0.0  ;;  %v711_v2 = vld [vmem:[#allocation2 + $0x12] sm:$0xff]  ;;  %v647_v13 = vsel %vm635_vm3, %v633_v56, 0.0 }
 0x103   : > { %v3818_v3 = vld [vmem:[#allocation2 + $0x11] sm:$0xff]  ;;  %v643_v4 = vsel %vm635_vm3, %v631_v62, 0.0  ;;  %690 = vst.msk [vmem:[#allocation2 + $0x51] sm:$0xff] %vm635_vm3, %v631_v62  ;;  %v632_v5 = vmax.f32 %v616_v63, 0.0  ;;  %v3173_v6 = vpack.i.bf16 %v711_v2, %v710_v59  ;;  %v3826_v11 = vld [vmem:[#allocation2 + $0x40] sm:$0xff] }
 0x104   : > { %v3168_v7 = vpack.i.bf16 %v3818_v3, %v702_v60  ;;  %v644_v9 = vadd.f32 %v643_v4, %v642_v0  ;;  %693 = vst.msk [vmem:[#allocation2 + $0x81] sm:$0xff] %vm635_vm3, %v634_v1  ;;  %v759_v10 = vld [vmem:[#allocation2 + $0x22] sm:$0xff]  ;;  %v3842_v20 = vld [vmem:[#allocation2 + $0x30] sm:$0xff]  ;;  %v649_v22 = vsel %vm635_vm3, %v634_v1, 0.0 }
 0x105   : > { %v3828_v12 = vld [vmem:[#allocation2 + $0x42] sm:$0xff]  ;;  %v645_v14 = vsel %vm635_vm3, %v632_v5, 0.0  ;;  %691 = vst.msk [vmem:[#allocation2 + $0x61] sm:$0xff] %vm635_vm3, %v632_v5  ;;  %3174 = vrot.lane.b32.xlu1 %v3173_v6, %s3559_s20  ;;  %v1011_v15 = vpack.c.bf16 %v3823_v8, %v759_v10  ;;  %v3183_v23 = vpack.i.bf16 %v3826_v11, %v3842_v20  ;;  %v3188_v33 = vpack.i.bf16 %v759_v10, %v711_v2  ;;  %v3870_v37 = vld [vmem:[#allocation2 + $0x10] sm:$0xff] }
 0x106   : > { %3169 = vrot.lane.b32.xlu0 %v3168_v7, %s3560_s2  ;;  %v646_v19 = vadd.f32 %v645_v14, %v644_v9  ;;  %v3178_v24 = vpack.i.bf16 %v3828_v12, %v3823_v8  ;;  %v3853_v26 = vld [vmem:[#allocation2 + $0x20] sm:$0xff]  ;;  %v3874_v41 = vld [vmem:[#allocation2 + $0x31] sm:$0xff]  ;;  %v3213_v47 = vpack.i.bf16 %v3823_v8, %v759_v10 }
 0x107   : > { %2996 = vmatprep.mubr.msk.bf16.mxu0 %vm635_vm3, %v1011_v15  ;;  %v3193_v32 = vpack.i.bf16 %v3842_v20, %v3853_v26  ;;  %v3867_v35 = vld [vmem:[#allocation2 + $0x21] sm:$0xff]  ;;  %v3203_v40 = vpack.i.bf16 %v3853_v26, %v3870_v37  ;;  %v750_v61 = vld [vmem:[#allocation2 + $0x90] sm:$0xff] }
 0x108   : > { %v648_v25 = vadd.f32 %v647_v13, %v646_v19  ;;  %v3198_v42 = vpack.i.bf16 %v3874_v41, %v3867_v35  ;;  %v3892_v48 = vld [vmem:[#allocation2 + $0x41] sm:$0xff]  ;;  %v758_v1 = vld [vmem:[#allocation2 + $0x91] sm:$0xff] }
 0x109   : > { %3184 = vrot.lane.b32.xlu1 %v3183_v23, %s3561_s25  ;;  %v764_v30 = vld [vmem:[#allocation2 + $0x72] sm:$0xff] }
 0x10a   : > { %3179 = vrot.lane.b32.xlu0 %v3178_v24, %s3560_s2  ;;  %v3860_v28 = vadd.f32 %v649_v22, %v648_v25  ;;  %v762_v29 = vld [vmem:[#allocation2 + $0x52] sm:$0xff] }
 0x10b   : > { %v1014_v31 = vpack.c.bf16 %v762_v29, %v3828_v12  ;;  %v765_v38 = vld [vmem:[#allocation2 + $0x82] sm:$0xff]  ;;  %v3881_v44 = vld [vmem:[#allocation2 + $0x50] sm:$0xff]  ;;  %v3233_v51 = vpack.i.bf16 %v762_v29, %v3828_v12 }
 0x10c   : > { %v763_v34 = vld [vmem:[#allocation2 + $0x62] sm:$0xff]  ;;  %v1020_v43 = vpack.c.bf16 %v766_v39, %v765_v38  ;;  %v3218_v45 = vpack.i.bf16 %v3881_v44, %v3826_v11  ;;  %v3888_v46 = vld [vmem:[#allocation2 + $0x51] sm:$0xff]  ;;  %v3238_v50 = vpack.i.bf16 %v765_v38, %v764_v30 }
 0x10d   : > { %2997 = vmatmul.mubr.msk.bf16.vlgmr.msra.gmra.mrb[8].mxu0 %vm635_vm3, %v1014_v31  ;;  %3194 = vrot.lane.b32.xlu1 %v3193_v32, %s3559_s20  ;;  %v1017_v36 = vpack.c.bf16 %v764_v30, %v763_v34  ;;  %v3223_v49 = vpack.i.bf16 %v3888_v46, %v3892_v48  ;;  %v3243_v52 = vpack.i.bf16 %v763_v34, %v762_v29  ;;  %v3901_v53 = vld [vmem:[#allocation2 + $0x60] sm:$0xff]  ;;  %v3904_v54 = vld [vmem:[#allocation2 + $0x70] sm:$0xff] }
 0x10e   : > { %3189 = vrot.lane.b32.xlu0 %v3188_v33, %s3560_s2  ;;  %v3268_v55 = vpack.i.bf16 %v3901_v53, %v3881_v44  ;;  %v3248_v56 = vpack.i.bf16 %v3904_v54, %v3901_v53  ;;  %v3911_v57 = vld [vmem:[#allocation2 + $0x61] sm:$0xff]  ;;  %v3913_v58 = vld [vmem:[#allocation2 + $0x71] sm:$0xff]  ;;  %v3278_v62 = vpack.i.bf16 %v764_v30, %v763_v34 }
 0x10f   : > { %3000 = vmatprep.mubr.msk.bf16.mxu0 %vm635_vm3, %v1017_v36  ;;  %v3273_v59 = vpack.i.bf16 %v3913_v58, %v3911_v57  ;;  %v749_v60 = vld [vmem:[#allocation2 + $0x80] sm:$0xff] }
 0x110   : > { %v3258_v63 = vpack.i.bf16 %v750_v61, %v749_v60  ;;  %v3922_v0 = vld [vmem:[#allocation2 + $0x81] sm:$0xff]  ;;  %v3283_v2 = vpack.i.bf16 %v749_v60, %v3904_v54 }
 0x111   : > { %3204 = vrot.lane.b32.xlu1 %v3203_v40, %s3561_s25  ;;  %v3263_v4 = vpack.i.bf16 %v758_v1, %v3922_v0  ;;  %v694_v12 = vld [vmem:[#allocation2] sm:$0xff] }
 0x112   : > { %3199 = vrot.lane.b32.xlu0 %v3198_v42, %s3561_s25 }
 0x115   : > { %3001 = vmatmul.mubr.msk.bf16.gmra.mrb[12].mxu0 %vm635_vm3, %v1020_v43  ;;  %3209 = vrot.lane.b32.xlu1 %v3198_v42, %s3560_s2 }
 0x116   : > { %3219 = vrot.lane.b32.xlu0 %v3218_v45, %s3559_s20  ;;  %3012 = vmatprep.mubr.msk.bf16.mxu0 %vm3562_vm8, %v3558_v18 }
 0x119   : > { %3214 = vrot.lane.b32.xlu1 %v3213_v47, %s3559_s20 }
 0x11a   : > { %3224 = vrot.lane.b32.xlu0 %v3223_v49, %s3561_s25 }
 0x11d   : > { %3229 = vrot.lane.b32.xlu1 %v3223_v49, %s3560_s2 }
 0x11e   : > { %3239 = vrot.lane.b32.xlu0 %v3238_v50, %s3560_s2 }
 0x121   : > { %3234 = vrot.lane.b32.xlu1 %v3233_v51, %s3559_s20 }
 0x122   : > { %3244 = vrot.lane.b32.xlu0 %v3243_v52, %s3560_s2 }
 0x125   : > { %3269 = vrot.lane.b32.xlu1 %v3268_v55, %s3561_s25 }
 0x126   : > { %3249 = vrot.lane.b32.xlu0 %v3248_v56, %s3559_s20 }
 0x129   : > { %3274 = vrot.lane.b32.xlu1 %v3273_v59, %s3560_s2 }
 0x12a   : > { %3254 = vrot.lane.b32.xlu0 %v3273_v59, %s3561_s25 }
 0x12d   : > { %3279 = vrot.lane.b32.xlu1 %v3278_v62, %s3559_s20 }
 0x12e   : > { %3259 = vrot.lane.b32.xlu0 %v3258_v63, %s3559_s20 }
 0x131   : > { %3284 = vrot.lane.b32.xlu1 %v3283_v2, %s3561_s25 }
 0x132   : > { %3264 = vrot.lane.b32.xlu0 %v3263_v4, %s3561_s25 }
 0x177   : > { %v3175_v5 = vpop.permute.xlu1 %3174 }
 0x178   : > { %v3170_v6 = vpop.permute.xlu0 %3169  ;;  %v3177_v15 = vunpack.i.h.bf16 %v3175_v5  ;;  %v3176_v16 = vunpack.i.l.bf16 %v3175_v5 }
 0x179   : > { %v3172_v9 = vunpack.i.h.bf16 %v3170_v6  ;;  %v3171_v10 = vunpack.i.l.bf16 %v3170_v6 }
 0x17b   : > { %v3929_v7 = vpop.permute.xlu1 %3184  ;;  %v959_v21 = vsel %vm635_vm3, %v694_v12, %v3171_v10  ;;  %v960_v22 = vsel %vm635_vm3, %v3870_v37, %v3172_v9 }
 0x17c   : > { %v3180_v8 = vpop.permute.xlu0 %3179  ;;  %v968_v36 = vsel %vm967_vm6, %v959_v21, %v3176_v16  ;;  %v969_v38 = vsel %vm967_vm6, %v960_v22, %v3177_v15  ;;  %v3187_v60 = vunpack.i.h.bf16 %v3929_v7  ;;  %v3186_v61 = vunpack.i.l.bf16 %v3929_v7 }
 0x17d   : > { %v3182_v47 = vunpack.i.h.bf16 %v3180_v8  ;;  %v3181_v49 = vunpack.i.l.bf16 %v3180_v8 }
 0x17f   : > { %v3195_v13 = vpop.permute.xlu1 %3194  ;;  %v988_v63 = vsel %vm635_vm3, %v3892_v48, %v3182_v47  ;;  %v987_v1 = vsel %vm635_vm3, %v3874_v41, %v3181_v49 }
 0x180   : > { %v3190_v14 = vpop.permute.xlu0 %3189  ;;  %v3197_v23 = vunpack.i.h.bf16 %v3195_v13  ;;  %v3196_v24 = vunpack.i.l.bf16 %v3195_v13 }
 0x181   : > { %v3192_v17 = vunpack.i.h.bf16 %v3190_v14  ;;  %v3191_v19 = vunpack.i.l.bf16 %v3190_v14 }
 0x183   : > { %v3205_v25 = vpop.permute.xlu1 %3204  ;;  %v985_v27 = vsel %vm635_vm3, %v3818_v3, %v3191_v19  ;;  %v986_v29 = vsel %vm635_vm3, %v3867_v35, %v3192_v17 }
 0x184   : > { %v3207_v30 = vunpack.i.h.bf16 %v3205_v25  ;;  %v3206_v31 = vunpack.i.l.bf16 %v3205_v25  ;;  %v3200_v32 = vpop.permute.xlu0 %3199  ;;  %v993_v37 = vsel %vm967_vm6, %v985_v27, %v3196_v24  ;;  %v994_v39 = vsel %vm967_vm6, %v986_v29, %v3197_v23 }
 0x185   : > { %v3202_v33 = vunpack.i.h.bf16 %v3200_v32  ;;  %v3201_v34 = vunpack.i.l.bf16 %v3200_v32 }
 0x186   : > { %v977_v40 = vsel %vm976_vm7, %v968_v36, %v3206_v31  ;;  %v978_v3 = vsel %vm976_vm7, %v969_v38, %v3207_v30 }
 0x187   : > { %v3210_v42 = vpop.permute.xlu1 %3209  ;;  %v1001_v35 = vsel %vm976_vm7, %v993_v37, %v3201_v34  ;;  %v1002_v43 = vsel %vm976_vm7, %v994_v39, %v3202_v33  ;;  %v1009_v45 = vpack.c.bf16 %v978_v3, %v977_v40 }
 0x188   : > { %v3220_v50 = vpop.permute.xlu0 %3219  ;;  %v1010_v51 = vpack.c.bf16 %v1002_v43, %v1001_v35  ;;  %v3212_v52 = vunpack.i.h.bf16 %v3210_v42  ;;  %v3211_v55 = vunpack.i.l.bf16 %v3210_v42 }
 0x189   : > { %v3222_v56 = vunpack.i.h.bf16 %v3220_v50  ;;  %v3221_v59 = vunpack.i.l.bf16 %v3220_v50 }
 0x18a   : > { %1216 = vmatprep.mubr.bf16.mxu1 %v1010_v51  ;;  %v962_v6 = vsel %vm635_vm3, %v3842_v20, %v3212_v52  ;;  %v961_v8 = vsel %vm635_vm3, %v3853_v26, %v3211_v55 }
 0x18b   : > { %1217 = vmatmul.mubr.bf16.vlgmr.msra.gmra.mrb[0].mxu1 %v1009_v45  ;;  %v3215_v62 = vpop.permute.xlu1 %3214  ;;  %v995_v7 = vsel %vm967_vm6, %v987_v1, %v3221_v59  ;;  %v996_v12 = vsel %vm967_vm6, %v988_v63, %v3222_v56 }
 0x18c   : > { %v3217_v2 = vunpack.i.h.bf16 %v3215_v62  ;;  %v3216_v4 = vunpack.i.l.bf16 %v3215_v62  ;;  %v3225_v5 = vpop.permute.xlu0 %3224 }
 0x18d   : > { %v3227_v9 = vunpack.i.h.bf16 %v3225_v5  ;;  %v3226_v10 = vunpack.i.l.bf16 %v3225_v5 }
 0x18e   : > { %v970_v48 = vsel %vm967_vm6, %v961_v8, %v3216_v4  ;;  %v971_v13 = vsel %vm967_vm6, %v962_v6, %v3217_v2 }
 0x18f   : > { %v3230_v41 = vpop.permute.xlu1 %3229  ;;  %v1003_v14 = vsel %vm976_vm7, %v995_v7, %v3226_v10  ;;  %v1004_v15 = vsel %vm976_vm7, %v996_v12, %v3227_v9  ;;  %v979_v20 = vsel %vm976_vm7, %v970_v48, %v3186_v61  ;;  %v980_v16 = vsel %vm976_vm7, %v971_v13, %v3187_v60 }
 0x190   : > { %v3240_v26 = vpop.permute.xlu0 %3239  ;;  %v1013_v17 = vpack.c.bf16 %v1004_v15, %v1003_v14  ;;  %v1012_v19 = vpack.c.bf16 %v980_v16, %v979_v20  ;;  %v3232_v23 = vunpack.i.h.bf16 %v3230_v41  ;;  %v3231_v24 = vunpack.i.l.bf16 %v3230_v41 }
 0x191   : > { %v3242_v52 = vunpack.i.h.bf16 %v3240_v26  ;;  %v3241_v55 = vunpack.i.l.bf16 %v3240_v26 }
 0x192   : > { %1224 = vmatprep.mubr.bf16.mxu1 %v1013_v17  ;;  %v964_v37 = vsel %vm635_vm3, %v3881_v44, %v3232_v23  ;;  %v963_v39 = vsel %vm635_vm3, %v3826_v11, %v3231_v24 }
 0x193   : > { %1225 = vmatmul.mubr.bf16.gmra.mrb[4].mxu1 %v1012_v19  ;;  %v3235_v21 = vpop.permute.xlu1 %3234  ;;  %v992_v6 = vsel %vm635_vm3, %v3922_v0, %v3242_v52  ;;  %v991_v8 = vsel %vm635_vm3, %v3913_v58, %v3241_v55 }
 0x194   : > { %v3245_v22 = vpop.permute.xlu0 %3244  ;;  %v3237_v27 = vunpack.i.h.bf16 %v3235_v21  ;;  %v3236_v29 = vunpack.i.l.bf16 %v3235_v21 }
 0x195   : > { %v3247_v31 = vunpack.i.h.bf16 %v3245_v22  ;;  %v3246_v32 = vunpack.i.l.bf16 %v3245_v22 }
 0x196   : > { %v972_v42 = vsel %vm967_vm6, %v963_v39, %v3236_v29  ;;  %v973_v35 = vsel %vm967_vm6, %v964_v37, %v3237_v27 }
 0x197   : > { %v3270_v25 = vpop.permute.xlu1 %3269  ;;  %v990_v43 = vsel %vm635_vm3, %v3911_v57, %v3247_v31  ;;  %v989_v45 = vsel %vm635_vm3, %v3888_v46, %v3246_v32  ;;  %v2830_v32 = vld [vmem:[%s4617_s5] ss:$0 sm:$0xff] }
 0x198   : > { %v3250_v30 = vpop.permute.xlu0 %3249  ;;  %v3272_v33 = vunpack.i.h.bf16 %v3270_v25  ;;  %v3271_v34 = vunpack.i.l.bf16 %v3270_v25 }
 0x199   : > { %v3252_v36 = vunpack.i.h.bf16 %v3250_v30  ;;  %v3251_v38 = vunpack.i.l.bf16 %v3250_v30 }
 0x19a   : > { %v981_v11 = vsel %vm976_vm7, %v972_v42, %v3271_v34  ;;  %v982_v51 = vsel %vm976_vm7, %v973_v35, %v3272_v33 }
 0x19b   : > { %v3275_v40 = vpop.permute.xlu1 %3274  ;;  %v997_v50 = vsel %vm967_vm6, %v989_v45, %v3251_v38  ;;  %v998_v44 = vsel %vm967_vm6, %v990_v43, %v3252_v36  ;;  %v1015_v2 = vpack.c.bf16 %v982_v51, %v981_v11 }
 0x19c   : > { %v3255_v3 = vpop.permute.xlu0 %3254  ;;  %v3277_v60 = vunpack.i.h.bf16 %v3275_v40  ;;  %v3276_v61 = vunpack.i.l.bf16 %v3275_v40 }
 0x19d   : > { %v3257_v47 = vunpack.i.h.bf16 %v3255_v3  ;;  %v3256_v49 = vunpack.i.l.bf16 %v3255_v3 }
 0x19e   : > { %v966_v10 = vsel %vm635_vm3, %v3904_v54, %v3277_v60  ;;  %v965_v7 = vsel %vm635_vm3, %v3901_v53, %v3276_v61 }
 0x19f   : > { %v3280_v56 = vpop.permute.xlu1 %3279  ;;  %v1005_v59 = vsel %vm976_vm7, %v997_v50, %v3256_v49  ;;  %v1006_v57 = vsel %vm976_vm7, %v998_v44, %v3257_v47 }
 0x1a0   : > { %v3260_v46 = vpop.permute.xlu0 %3259  ;;  %v1016_v62 = vpack.c.bf16 %v1006_v57, %v1005_v59  ;;  %v3282_v63 = vunpack.i.h.bf16 %v3280_v56  ;;  %v3281_v1 = vunpack.i.l.bf16 %v3280_v56 }
 0x1a1   : > { %v3262_v4 = vunpack.i.h.bf16 %v3260_v46  ;;  %v3261_v5 = vunpack.i.l.bf16 %v3260_v46 }
 0x1a2   : > { %1232 = vmatprep.mubr.bf16.mxu1 %v1016_v62  ;;  %v974_v41 = vsel %vm967_vm6, %v965_v7, %v3281_v1  ;;  %v975_v14 = vsel %vm967_vm6, %v966_v10, %v3282_v63 }
 0x1a3   : > { %1233 = vmatmul.mubr.bf16.gmra.mrb[8].mxu1 %v1015_v2  ;;  %v3285_v9 = vpop.permute.xlu1 %3284  ;;  %v999_v20 = vsel %vm967_vm6, %v991_v8, %v3261_v5  ;;  %v1000_v58 = vsel %vm967_vm6, %v992_v6, %v3262_v4 }
 0x1a4   : > { %v3287_v12 = vunpack.i.h.bf16 %v3285_v9  ;;  %v3286_v48 = vunpack.i.l.bf16 %v3285_v9  ;;  %v3265_v13 = vpop.permute.xlu0 %3264 }
 0x1a5   : > { %v3267_v15 = vunpack.i.h.bf16 %v3265_v13  ;;  %v3266_v0 = vunpack.i.l.bf16 %v3265_v13 }
 0x1a6   : > { %v983_v16 = vsel %vm976_vm7, %v974_v41, %v3286_v48  ;;  %v984_v54 = vsel %vm976_vm7, %v975_v14, %v3287_v12 }
 0x1a7   : > { %v1007_v26 = vsel %vm976_vm7, %v999_v20, %v3266_v0  ;;  %v1008_v53 = vsel %vm976_vm7, %v1000_v58, %v3267_v15  ;;  %v1018_v17 = vpack.c.bf16 %v984_v54, %v983_v16 }
 0x1a8   : > { %v1019_v19 = vpack.c.bf16 %v1008_v53, %v1007_v26 }
 0x1aa   : > { %1240 = vmatprep.mubr.bf16.mxu1 %v1019_v19 }
 0x1ab   : > { %1241 = vmatmul.mubr.bf16.gmra.mrb[12].mxu1 %v1018_v17 }
 0x1ac   : > { %3044 = vmatprep.mubr.msk.bf16.mxu1 %vm3562_vm8, %v3558_v18 }
 0x1e0   : > { %v2998_v21 = vpop.f32.mrb[8].mxu0 }
 0x1e1   : > { %v1283_v22 = vpop.f32.mrb[9].mxu0 }
 0x1e2   : > { %v2999_v23 = vpop.f32.mrb[10].mxu0 }
 0x1e3   : > { %v1286_v24 = vpop.f32.mrb[11].mxu0 }
 0x1e8   : > { %v3002_v25 = vpop.f32.mrb[12].mxu0 }
 0x1e9   : > { %v1299_v27 = vpop.f32.mrb[13].mxu0 }
 0x1ea   : > { %v3996_v29 = vpop.f32.mrb[14].mxu0 }
 0x1eb   : > { %v1302_v30 = vpop.f32.mrb[15].mxu0 }
 0x25e   : > { %v2910_v31 = vpop.f32.mrb[0].mxu1 }
 0x25f   : > { %v2911_v33 = vpop.f32.mrb[1].mxu1 }
 0x260   : > { %v2912_v34 = vadd.f32 %v2911_v33, %v2910_v31  ;;  %v2913_v36 = vpop.f32.mrb[2].mxu1 }
 0x261   : > { %v2914_v38 = vpop.f32.mrb[3].mxu1 }
 0x262   : > { %v1219_v37 = vadd.f32 %v2912_v34, %v2830_v32  ;;  %v2915_v39 = vadd.f32 %v2914_v38, %v2913_v36 }
 0x264   : > { %v4005_v40 = vadd.f32 %v1283_v22, %v1219_v37  ;;  %v1222_v3 = vadd.f32 %v2915_v39, %v2830_v32  ;;  %v1583_v39 = vld [vmem:[%s4620_s8] sm:$0xf] }
 0x266   : > { %v4007_v42 = vadd.f32 %v1286_v24, %v1222_v3  ;;  %v2916_v35 = vpop.f32.mrb[4].mxu1  ;;  %v1314_v45 = vmax.f32 %v4005_v40, 0.0  ;;  %v3452_v40 = vld [vmem:[%s4622_s10 + $0x20] sm:$0xff]  }
 0x267   : > { %v2917_v43 = vpop.f32.mrb[5].mxu1 }
 0x268   : > { %v1315_v47 = vmax.f32 %v4007_v42, 0.0  ;;  %v2918_v49 = vadd.f32 %v2917_v43, %v2916_v35  ;;  %v2919_v50 = vpop.f32.mrb[6].mxu1 }
 0x269   : > { %v2920_v44 = vpop.f32.mrb[7].mxu1 }
 0x26a   : > { %v1322_v11 = vpack.c.bf16 %v1315_v47, %v1314_v45  ;;  %v1227_v51 = vadd.f32 %v2918_v49, %v2830_v32  ;;  %v2921_v52 = vadd.f32 %v2920_v44, %v2919_v50 }
 0x26c   : > { %v4015_v55 = vadd.f32 %v2998_v21, %v1227_v51  ;;  %v1230_v56 = vadd.f32 %v2921_v52, %v2830_v32  ;;  %1326 = vxpose.xlu0.c.b16.start [1/4] (short) (narrow) %v1322_v11, 16  ;;  %3005 = vmatpush3.bf16.msra.mxu0 %v1322_v11  ;;  %v1482_v52 = vld [vmem:[%s4618_s6] sm:$0xf] }
 0x26d   : > { %3006 = vmatprep.subr.bf16.mxu0 %v3558_v18 }
 0x26e   : > { %v4018_v59 = vadd.f32 %v2999_v23, %v1230_v56  ;;  %v1316_v57 = vmax.f32 %v4015_v55, 0.0 }
 0x270   : > { %v1317_v60 = vmax.f32 %v4018_v59, 0.0 }
 0x272   : > { %v4026_v61 = vpack.c.bf16 %v1317_v60, %v1316_v57 }
 0x274   : > { %1327 = vxpose.xlu0.c.b16.cont [2/4] (short) (narrow) %v4026_v61, 16  ;;  %3007 = vmatpush3.bf16.msra.mxu0 %v4026_v61 }
 0x275   : > { %3008 = vmatprep.subr.bf16.mxu0 %v3558_v18 }
 0x276   : > { %v2922_v46 = vpop.f32.mrb[8].mxu1 }
 0x277   : > { %v2923_v62 = vpop.f32.mrb[9].mxu1 }
 0x278   : > { %v2924_v63 = vadd.f32 %v2923_v62, %v2922_v46  ;;  %v2925_v1 = vpop.f32.mrb[10].mxu1 }
 0x279   : > { %v2926_v2 = vpop.f32.mrb[11].mxu1 }
 0x27a   : > { %v1235_v4 = vadd.f32 %v2924_v63, %v2830_v32  ;;  %v2927_v5 = vadd.f32 %v2926_v2, %v2925_v1  ;;  %v1516_v63 = vsel %vm1514_vm10, %v1482_v52, 0  ;;  %v1584_v2 = vld [vmem:[#allocation4] sm:$0x1] }
 0x27c   : > { %v4031_v6 = vadd.f32 %v1299_v27, %v1235_v4  ;;  %v1238_v8 = vadd.f32 %v2927_v5, %v2830_v32 }
 0x27e   : > { %v4033_v9 = vadd.f32 %v1302_v30, %v1238_v8  ;;  %v2928_v10 = vpop.f32.mrb[12].mxu1  ;;  %v1318_v12 = vmax.f32 %v4031_v6, 0.0 }
 0x27f   : > { %v2929_v7 = vpop.f32.mrb[13].mxu1 }
 0x280   : > { %v1319_v48 = vmax.f32 %v4033_v9, 0.0  ;;  %v2930_v13 = vadd.f32 %v2929_v7, %v2928_v10  ;;  %v2931_v41 = vpop.f32.mrb[14].mxu1  ;;  %v3454_v9 = vld [vmem:[%s4622_s10 + $0x30] sm:$0xff]  }
 0x281   : > { %v2932_v14 = vpop.f32.mrb[15].mxu1 }
 0x282   : > { %v4041_v15 = vpack.c.bf16 %v1319_v48, %v1318_v12  ;;  %v1243_v0 = vadd.f32 %v2930_v13, %v2830_v32  ;;  %v2933_v20 = vadd.f32 %v2932_v14, %v2931_v41 }
 0x284   : > { %v4043_v58 = vadd.f32 %v3002_v25, %v1243_v0  ;;  %v1246_v16 = vadd.f32 %v2933_v20, %v2830_v32  ;;  %1328 = vxpose.xlu0.c.b16.cont [3/4] (short) (narrow) %v4041_v15, 16  ;;  %3009 = vmatpush3.bf16.msra.mxu0 %v4041_v15 }
 0x285   : > { %3010 = vmatprep.subr.bf16.mxu0 %v3558_v18 }
 0x286   : > { %v4049_v54 = vadd.f32 %v3996_v29, %v1246_v16  ;;  %v1320_v26 = vmax.f32 %v4043_v58, 0.0 }
 0x288   : > { %v4630_v53 = vmax.f32 %v4049_v54, 0.0 }
 0x28a   : > { %v4057_v17 = vpack.c.bf16 %v4630_v53, %v1320_v26 }
 0x28c   : > { %1329 = vxpose.xlu0.c.b16.end [4/4] (short) (narrow) %v4057_v17, 16  ;;  %3011 = vmatpush3.bf16.msra.mxu0 %v4057_v17 }
 0x295   : > { %1494 = vrot.lane.b32.xlu0 %v1322_v11, %s3563_s27 }
 0x299   : > { %1498 = vrot.lane.b32.xlu0 %v4041_v15, %s3563_s27 }
 0x29d   : > { %1500 = vrot.lane.b32.xlu0 %v4057_v17, %s3563_s27 }
 0x2bb   : > { %1594 = vxpose.xlu0.c.b16.start.end [1/1] (short) (narrow) %v1583_v39, 16 }
 0x2e6   : > { %v1334_v19 = vpop.trf.xlu0 }
 0x2e7   : > { %3013 = vmatmul.mubr.msk.bf16.vlgmr.msra.gmra.mrb[16].mxu0 %vm967_vm6, %v1334_v19 }
 0x2e8   : > { %3018 = vmatprep.mubr.msk.bf16.mxu0 %vm1385_vm9, %v1322_v11 }
 0x307   : > { %v1495_v21 = vpop.permute.xlu0 %1494 }
 0x308   : > { %v1503_v22 = vsel %vm1385_vm9, %v1495_v21, 0 }
 0x309   : > { %3037 = vmatpush3.bf16.xpose.msra.mxu1 %v1503_v22 }
 0x30a   : > { %3038 = vmatprep.subr.bf16.mxu1 %v3558_v18 }
 0x30b   : > { %v1499_v49 = vpop.permute.xlu0 %1498 }
 0x30c   : > { %v1509_v11 = vsel %vm1385_vm9, %v1499_v49, 0 }
 0x30f   : > { %v1501_v46 = vpop.permute.xlu0 %1500 }
 0x310   : > { %v1512_v62 = vsel %vm1385_vm9, %v1501_v46, 0 }
 0x321   : > { %v1602_v1 = vpop.trf.xlu0 }
 0x3ba   : > { %v1379_v23 = vpop.f32.mrb[16].mxu0 }
 0x3bb   : > { %v3014_v24 = vpop.f32.mrb[17].mxu0  ;;  %v1386_v25 = vsel %vm1385_vm9, %v1379_v23, -inf }
 0x3bc   : > { %1387 = vmax.xlane.f32.xlu1 %v1386_v25  ;;  %v1382_v27 = vpop.f32.mrb[18].mxu0 }
 0x3bd   : > { %v3015_v29 = vpop.f32.mrb[19].mxu0 }
 0x449   : > { %v1388_v30 = vpop.xlane.xlu1 %1387 }
 0x44a   : > { %v1389_v31 = vsub.f32 %v1388_v30, %v1379_v23 }
 0x44c   : > { %v1390_v32 = vsel %vm1385_vm9, %v1389_v31, -inf }
 0x44d   : > { %1391 = vmax.xlane.f32.xlu1 %v1390_v32 }
 0x4da   : > { %v1392_v33 = vpop.xlane.xlu1 %1391 }
 0x4db   : > { %v1393_v34 = vsub.f32 %v1389_v31, %v1392_v33 }
 0x4dd   : > { %v1394_v36 = vmul.f32 1.442695, %v1393_v34 }
 0x4df   : > { %3457 = vpow2.f32 %v1394_v36 }
 0x4e9   : > { %v3458_v38 = vpop.eup %3457 }
 0x4ea   : > { %v1396_v37 = vsel %vm1385_vm9, %v3458_v38, 0.0 }
 0x4eb   : > { %1397 = vadd.xlane.f32.xlu1 %v1396_v37 }
 0x4fc   : > { %1496 = vrot.lane.b32.xlu1 %v4026_v61, %s3563_s27  ;;  %s3565_s27 = smov 127  }
 0x578   : > { %v1398_v3 = vpop.xlane.xlu1 %1397 }
 0x579   : > { %3459 = vrcp.f32 %v1398_v3 }
 0x57c   : > { %v1497_v35 = vpop.permute.xlu1 %1496 }
 0x57d   : > { %v1506_v43 = vsel %vm1385_vm9, %v1497_v35, 0 }
 0x57e   : > { %3039 = vmatpush3.bf16.xpose.msra.mxu1 %v1506_v43 }
 0x57f   : > { %3040 = vmatprep.subr.bf16.mxu1 %v3558_v18 }
 0x583   : > { %v3460_v50 = vpop.eup %3459 }
 0x584   : > { %v1400_v44 = vmul.f32 %v3460_v50, %v3458_v38 }
 0x586   : > { %3041 = vmatpush3.bf16.xpose.msra.mxu1 %v1509_v11  ;;  %v1401_v51 = vpack.c.bf16 %v1400_v44, %v1400_v44 }
 0x587   : > { %3042 = vmatprep.subr.bf16.mxu1 %v3558_v18 }
 0x588   : > { %3112 = vmatprep.subr.msk.bf16.mxu0 %vm1385_vm9, %v1401_v51  ;;  %v1415_v56 = vsel %vm1385_vm9, %v1401_v51, 0 }
 0x589   : > { %3017 = vmatpush3.bf16.xpose.msra.mxu0 %v1415_v56 }
 0x58a   : > { %3113 = vmatprep.subr.msk.bf16.mxu0 %vm1514_vm10, %v1482_v52 }
 0x58e   : > { %3043 = vmatpush3.bf16.xpose.msra.mxu1 %v1512_v62 }
 0x590   : > { %3019 = vmatmul.mubr.msk.bf16.vlgmr.msra.gmra.mrb[20].mxu0 %vm1385_vm9, %v4026_v61  ;;  %v3564_v61 = vmov 0  }
 0x591   : > { %3022 = vmatprep.mubr.msk.bf16.mxu0 %vm1385_vm9, %v4041_v15  ;;  %3027 = vmatpush3.bf16.msra.mxu0 %v1516_v63 }
 0x592   : > { %3288 = vset.pattern.permute.xlu1 %v3564_v61  ;;  %3289 = vset.pattern.permute.xlu0 %v3564_v61 }
 0x593   : > { %1587 = vperm.xlu1 %3288, %v1584_v2   ;;  %2449 = vmatprep.subr.bf16.mxu1 %v3564_v61 }
 0x595   : > { %3045 = vmatmul.mubr.msk.bf16.vlgmr.msra.gmra.mrb[16].mxu1 %vm1385_vm9, %v1602_v1 }
 0x598   : > { %3023 = vmatmul.mubr.msk.bf16.gmra.mrb[24].mxu0 %vm1385_vm9, %v4057_v17  ;;  %v2858_v17 = vld [vmem:[%s4619_s7] ss:$0 sm:$0xff] }
 0x599   : > { %3028 = vmatprep.mubr.msk.bf16.mxu0 %vm1385_vm9, %v1495_v21 }
 0x5a0   : > { %3029 = vmatmul.mubr.msk.bf16.vlgmr.msra.gmra.mrb[28].mxu0 %vm1385_vm9, %v1497_v35 }
 0x5a1   : > { %3032 = vmatprep.mubr.msk.bf16.mxu0 %vm1385_vm9, %v1499_v49  ;;  %v1590_v49 = vlaneseq }
 0x5a3   : > { %v1591_v50 = vshrl.u32 %v1590_v49, 7 }
 0x5a5   : > { %v1592_v44 = vsub.s32 0, %v1591_v50 }
 0x5a8   : > { %3033 = vmatmul.mubr.msk.bf16.gmra.mrb[32].mxu0 %vm1385_vm9, %v1501_v46 }
 0x612   : > { %v1588_v11 = vpop.permute.xlu1 %1587 }
 0x613   : > { %v1593_v51 = vrot.slane %v1588_v11, %v1592_v44 }
 0x663   : > { %v4098_v4 = vpop.f32.mrb[20].mxu0 }
 0x664   : > { %v4100_v5 = vpop.f32.mrb[21].mxu0 }
 0x665   : > { %v4102_v8 = vpop.f32.mrb[22].mxu0 }
 0x666   : > { %v4104_v10 = vpop.f32.mrb[23].mxu0 }
 0x668   : > { %v1647_v7 = vpop.f32.mrb[16].mxu1 }
 0x669   : > { %v3046_v13 = vpop.f32.mrb[17].mxu1  ;;  %v1648_v52 = vadd.f32 %v1647_v7, %v1593_v51 }
 0x66a   : > { %v1650_v41 = vpop.f32.mrb[18].mxu1 }
 0x66b   : > { %v4106_v14 = vpop.f32.mrb[24].mxu0  ;;  %v3047_v15 = vpop.f32.mrb[19].mxu1  ;;  %v1696_v46 = vrot.slane %v1648_v52, %v1592_v44 }
 0x66c   : > { %v4108_v0 = vpop.f32.mrb[25].mxu0 }
 0x66d   : > { %v4110_v20 = vpop.f32.mrb[26].mxu0 }
 0x66e   : > { %v4112_v16 = vpop.f32.mrb[27].mxu0 }
 0x673   : > { %v3030_v19 = vpop.f32.mrb[28].mxu0 }
 0x674   : > { %v4117_v21 = vadd.f32 %v3030_v19, %v2858_v17  ;;  %v1552_v22 = vpop.f32.mrb[29].mxu0 }
 0x675   : > { %v3031_v23 = vpop.f32.mrb[30].mxu0  ;;  %v4122_v27 = vadd.f32 %v2858_v17, %v1552_v22 }
 0x676   : > { %v4119_v24 = vadd.f32 %v3031_v23, %v2858_v17  ;;  %1665 = vperm.xlu1 %3288, %v4117_v21   ;;  %v1555_v25 = vpop.f32.mrb[31].mxu0 }
 0x677   : > { %v4124_v29 = vadd.f32 %v2858_v17, %v1555_v25 }
 0x678   : > { %v1798_v30 = vpack.c.bf16 %v4119_v24, %v4117_v21 }
 0x679   : > { %v1797_v31 = vpack.c.bf16 %v4124_v29, %v4122_v27 }
 0x67a   : > { %1655 = vperm.xlu1 %3288, %v4122_v27  }
 0x67b   : > { %v3034_v32 = vpop.f32.mrb[32].mxu0 }
 0x67c   : > { %v4131_v33 = vadd.f32 %v3034_v32, %v2858_v17  ;;  %v1568_v34 = vpop.f32.mrb[33].mxu0 }
 0x67d   : > { %v3035_v36 = vpop.f32.mrb[34].mxu0  ;;  %v4137_v39 = vadd.f32 %v2858_v17, %v1568_v34 }
 0x67e   : > { %v4133_v38 = vadd.f32 %v3035_v36, %v2858_v17  ;;  %1685 = vperm.xlu0 %3289, %v4131_v33   ;;  %v1571_v37 = vpop.f32.mrb[35].mxu0  ;;  %1660 = vperm.xlu1 %3288, %v4124_v29  }
 0x67f   : > { %v4139_v3 = vadd.f32 %v2858_v17, %v1571_v37 }
 0x680   : > { %v1800_v35 = vpack.c.bf16 %v4133_v38, %v4131_v33 }
 0x681   : > { %v1799_v43 = vpack.c.bf16 %v4139_v3, %v4137_v39 }
 0x682   : > { %1670 = vperm.xlu1 %3288, %v4119_v24  }
 0x686   : > { %1675 = vperm.xlu1 %3288, %v4137_v39  }
 0x68a   : > { %1680 = vperm.xlu1 %3288, %v4139_v3  }
 0x68e   : > { %1690 = vperm.xlu1 %3288, %v4133_v38  }
 0x6f5   : > { %v1666_v56 = vpop.permute.xlu1 %1665 }
 0x6f6   : > { %v1699_v41 = vmul.f32 %v1696_v46, %v1666_v56 }
 0x6f8   : > { %v1711_v22 = vsel %vm967_vm6, %v1699_v41, -inf }
 0x6f9   : > { %v1656_v62 = vpop.permute.xlu1 %1655 }
 0x6fa   : > { %v1697_v63 = vmul.f32 %v1696_v46, %v1656_v62 }
 0x6fc   : > { %v1705_v1 = vsel %vm967_vm6, %v1697_v63, -inf }
 0x6fd   : > { %1706 = vmax.xlane.f32.xlu1 %v1705_v1  ;;  %v1661_v2 = vpop.permute.xlu1 %1660  ;;  %v1686_v7 = vpop.permute.xlu0 %1685 }
 0x6fe   : > { %v1698_v13 = vmul.f32 %v1696_v46, %v1661_v2  ;;  %v1703_v34 = vmul.f32 %v1696_v46, %v1686_v7 }
 0x700   : > { %v1708_v15 = vsel %vm967_vm6, %v1698_v13, -inf  ;;  %v1723_v49 = vsel %vm967_vm6, %v1703_v34, -inf }
 0x701   : > { %1709 = vmax.xlane.f32.xlu0 %v1708_v15  ;;  %v1671_v17 = vpop.permute.xlu1 %1670 }
 0x702   : > { %v1700_v19 = vmul.f32 %v1696_v46, %v1671_v17 }
 0x704   : > { %v1714_v23 = vsel %vm967_vm6, %v1700_v19, -inf }
 0x705   : > { %1712 = vmax.xlane.f32.xlu0 %v1711_v22  ;;  %1715 = vmax.xlane.f32.xlu1 %v1714_v23  ;;  %v1676_v25 = vpop.permute.xlu1 %1675 }
 0x706   : > { %v1701_v32 = vmul.f32 %v1696_v46, %v1676_v25 }
 0x708   : > { %v1717_v36 = vsel %vm967_vm6, %v1701_v32, -inf }
 0x709   : > { %1718 = vmax.xlane.f32.xlu0 %v1717_v36  ;;  %v1681_v37 = vpop.permute.xlu1 %1680 }
 0x70a   : > { %v1702_v11 = vmul.f32 %v1696_v46, %v1681_v37 }
 0x70c   : > { %v1720_v52 = vsel %vm967_vm6, %v1702_v11, -inf }
 0x70d   : > { %1724 = vmax.xlane.f32.xlu0 %v1723_v49  ;;  %v1691_v50 = vpop.permute.xlu1 %1690 }
 0x70e   : > { %v1704_v44 = vmul.f32 %v1696_v46, %v1691_v50 }
 0x710   : > { %v1726_v51 = vsel %vm967_vm6, %v1704_v44, -inf }
 0x711   : > { %1727 = vmax.xlane.f32.xlu1 %v1726_v51 }
 0x715   : > { %1721 = vmax.xlane.f32.xlu1 %v1720_v52 }
 0x78a   : > { %v1707_v56 = vpop.xlane.xlu1 %1706 }
 0x78b   : > { %v1729_v1 = vsub.f32 %v1697_v63, %v1707_v56 }
 0x78d   : > { %v1737_v7 = vmul.f32 1.442695, %v1729_v1 }
 0x78e   : > { %v1710_v62 = vpop.xlane.xlu0 %1709 }
 0x78f   : > { %v1730_v2 = vsub.f32 %v1698_v13, %v1710_v62 }
 0x791   : > { %v1739_v49 = vmul.f32 1.442695, %v1730_v2 }
 0x792   : > { %v1713_v15 = vpop.xlane.xlu0 %1712  ;;  %v1716_v17 = vpop.xlane.xlu1 %1715 }
 0x793   : > { %v1731_v22 = vsub.f32 %v1699_v41, %v1713_v15  ;;  %v1732_v23 = vsub.f32 %v1700_v19, %v1716_v17 }
 0x795   : > { %v1741_v25 = vmul.f32 1.442695, %v1731_v22  ;;  %v1743_v36 = vmul.f32 1.442695, %v1732_v23 }
 0x796   : > { %v1719_v50 = vpop.xlane.xlu0 %1718 }
 0x797   : > { %3461 = vpow2.f32 %v1741_v25  ;;  %v1733_v46 = vsub.f32 %v1701_v32, %v1719_v50 }
 0x798   : > { %3463 = vpow2.f32 %v1743_v36 }
 0x799   : > { %3465 = vpow2.f32 %v1737_v7  ;;  %v1745_v52 = vmul.f32 1.442695, %v1733_v46 }
 0x79a   : > { %3467 = vpow2.f32 %v1739_v49  ;;  %v1725_v37 = vpop.xlane.xlu0 %1724 }
 0x79b   : > { %v1735_v51 = vsub.f32 %v1703_v34, %v1725_v37 }
 0x79d   : > { %v1749_v53 = vmul.f32 1.442695, %v1735_v51 }
 0x79e   : > { %v1728_v17 = vpop.xlane.xlu1 %1727 }
 0x79f   : > { %3469 = vpow2.f32 %v1749_v53  ;;  %v1736_v22 = vsub.f32 %v1704_v44, %v1728_v17 }
 0x7a0   : > { %3471 = vpow2.f32 %v1745_v52 }
 0x7a1   : > { %v4157_v63 = vpop.eup %3461  ;;  %v1751_v7 = vmul.f32 1.442695, %v1736_v22 }
 0x7a2   : > { %v4159_v13 = vpop.eup %3463  ;;  %v1759_v41 = vsel %vm967_vm6, %v4157_v63, 0.0  ;;  %v1722_v23 = vpop.xlane.xlu1 %1721 }
 0x7a3   : > { %v3466_v19 = vpop.eup %3465  ;;  %1760 = vadd.xlane.f32.xlu0 %v1759_v41  ;;  %v1762_v56 = vsel %vm967_vm6, %v4159_v13, 0.0  ;;  %v1734_v25 = vsub.f32 %v1702_v11, %v1722_v23  ;;  %3473 = vpow2.f32 %v1751_v7 }
 0x7a4   : > { %v3468_v32 = vpop.eup %3467  ;;  %1763 = vadd.xlane.f32.xlu1 %v1762_v56  ;;  %v1753_v34 = vsel %vm967_vm6, %v3466_v19, 0.0 }
 0x7a5   : > { %v1756_v53 = vsel %vm967_vm6, %v3468_v32, 0.0  ;;  %v1747_v36 = vmul.f32 1.442695, %v1734_v25 }
 0x7a7   : > { %1754 = vadd.xlane.f32.xlu0 %v1753_v34  ;;  %3475 = vpow2.f32 %v1747_v36 }
 0x7a8   : > { %1757 = vadd.xlane.f32.xlu1 %v1756_v53 }
 0x7a9   : > { %v4167_v62 = vpop.eup %3469 }
 0x7aa   : > { %v1771_v1 = vsel %vm967_vm6, %v4167_v62, 0.0  ;;  %v4171_v2 = vpop.eup %3471 }
 0x7ab   : > { %1772 = vadd.xlane.f32.xlu0 %v1771_v1  ;;  %v1765_v15 = vsel %vm967_vm6, %v4171_v2, 0.0 }
 0x7ad   : > { %v3474_v49 = vpop.eup %3473 }
 0x7ae   : > { %v1774_v21 = vsel %vm967_vm6, %v3474_v49, 0.0 }
 0x7af   : > { %1766 = vadd.xlane.f32.xlu0 %v1765_v15 }
 0x7b1   : > { %v3476_v24 = vpop.eup %3475 }
 0x7b9   : > { %1807 = vrot.lane.b32.xlu1 %v1798_v30, %s3565_s27  ;;  %v1768_v30 = vsel %vm967_vm6, %v3476_v24, 0.0 }
 0x7bd   : > { %1809 = vrot.lane.b32.xlu1 %v1799_v43, %s3565_s27 }
 0x7c5   : > { %1805 = vrot.lane.b32.xlu0 %v1797_v31, %s3565_s27 }
 0x7e1   : > { %1775 = vadd.xlane.f32.xlu1 %v1774_v21 }
 0x7e5   : > { %1769 = vadd.xlane.f32.xlu1 %v1768_v30 }
 0x7f6   : > { %1811 = vrot.lane.b32.xlu1 %v1800_v35, %s3565_s27  ;;  %s3568_s27 = smov 48  }
 0x830   : > { %v1761_v27 = vpop.xlane.xlu0 %1760 }
 0x831   : > { %v1764_v29 = vpop.xlane.xlu1 %1763 }
 0x834   : > { %v1755_v31 = vpop.xlane.xlu0 %1754 }
 0x835   : > { %3477 = vrcp.f32 %v1755_v31  ;;  %v1758_v39 = vpop.xlane.xlu1 %1757  ;;  %v3448_v31 = vld [vmem:[%s4622_s10] sm:$0xff]  }
 0x836   : > { %3479 = vrcp.f32 %v1758_v39  ;;  %2450 = vmatpush1.bf16.msra.mxu1 %v3448_v31  ;;  %v3449_v39 = vld [vmem:[%s4622_s10 + $0x8] sm:$0xff]  }
 0x837   : > { %3481 = vrcp.f32 %v1761_v27  ;;  %2451 = vmatprep.subr.bf16.mxu1 %v3564_v61 }
 0x838   : > { %v1773_v3 = vpop.xlane.xlu0 %1772  ;;  %3483 = vrcp.f32 %v1764_v29 }
 0x839   : > { %v1808_v50 = vpop.permute.xlu1 %1807 }
 0x83a   : > { %2452 = vmatpush1.bf16.msra.mxu1 %v3449_v39 }
 0x83b   : > { %2453 = vmatprep.subr.bf16.mxu1 %v3564_v61 }
 0x83c   : > { %v1767_v43 = vpop.xlane.xlu0 %1766 }
 0x83d   : > { %v1810_v33 = vpop.permute.xlu1 %1809 }
 0x83f   : > { %v3478_v44 = vpop.eup %3477 }
 0x840   : > { %v3480_v11 = vpop.eup %3479  ;;  %v1806_v46 = vpop.permute.xlu0 %1805  ;;  %v1785_v37 = vmul.f32 %v3478_v44, %v3466_v19 }
 0x841   : > { %3048 = vmatprep.subr.bf16.mxu0 %v1806_v46  ;;  %v1786_v51 = vmul.f32 %v3480_v11, %v3468_v32  ;;  %v3482_v35 = vpop.eup %3481 }
 0x842   : > { %3049 = vmatpush3.bf16.msra.mxu0 %v1806_v46  ;;  %v3484_v41 = vpop.eup %3483  ;;  %v1787_v56 = vmul.f32 %v3482_v35, %v4157_v63 }
 0x843   : > { %3050 = vmatprep.subr.bf16.mxu0 %v1808_v50  ;;  %v1793_v52 = vpack.c.bf16 %v1786_v51, %v1785_v37  ;;  %v1788_v32 = vmul.f32 %v3484_v41, %v4159_v13  ;;  %v3451_v51 = vld [vmem:[%s4622_s10 + $0x18] sm:$0xff]  }
 0x845   : > { %3056 = vmatprep.mubr.msk.bf16.mxu0 %vm967_vm6, %v1793_v52  ;;  %v1794_v53 = vpack.c.bf16 %v1788_v32, %v1787_v56 }
 0x846   : > { %3051 = vmatpush3.bf16.msra.mxu0 %v1808_v50 }
 0x847   : > { %3052 = vmatprep.subr.bf16.mxu0 %v1810_v33 }
 0x84a   : > { %3053 = vmatpush3.bf16.msra.mxu0 %v1810_v33 }
 0x86e   : > { %v1776_v38 = vpop.xlane.xlu1 %1775 }
 0x86f   : > { %3485 = vrcp.f32 %v1776_v38 }
 0x870   : > { %3487 = vrcp.f32 %v1767_v43  ;;  %v2868_v43 = vld [vmem:[%s4640_s1] ss:$0 sm:$0xff] }
 0x871   : > { %3489 = vrcp.f32 %v1773_v3  ;;  %v3450_v3 = vld [vmem:[%s4622_s10 + $0x10] sm:$0xff]  }
 0x872   : > { %v1770_v19 = vpop.xlane.xlu1 %1769  ;;  %2454 = vmatpush1.bf16.msra.mxu1 %v3450_v3 }
 0x873   : > { %3491 = vrcp.f32 %v1770_v19  ;;  %2455 = vmatprep.subr.bf16.mxu1 %v3564_v61 }
 0x876   : > { %v1812_v34 = vpop.permute.xlu1 %1811  ;;  %2456 = vmatpush1.bf16.msra.mxu1 %v3451_v51 }
 0x877   : > { %3054 = vmatprep.subr.bf16.mxu0 %v1812_v34  ;;  %2457 = vmatprep.subr.bf16.mxu1 %v3564_v61 }
 0x878   : > { %3055 = vmatpush3.bf16.msra.mxu0 %v1812_v34 }
 0x879   : > { %v3486_v1 = vpop.eup %3485 }
 0x87a   : > { %v3488_v15 = vpop.eup %3487  ;;  %v1792_v23 = vmul.f32 %v3486_v1, %v3474_v49  ;;  %2458 = vmatpush1.bf16.msra.mxu1 %v3452_v40 }
 0x87b   : > { %3057 = vmatmul.mubr.msk.bf16.vlgmr.msra.gmra.mrb[36].mxu0 %vm967_vm6, %v1794_v53  ;;  %v3490_v17 = vpop.eup %3489  ;;  %v1789_v7 = vmul.f32 %v3488_v15, %v4171_v2  ;;  %2459 = vmatprep.subr.bf16.mxu1 %v3564_v61  ;;  %v2010_v53 = vld [vmem:[#allocation3 + $0x2] sm:$0xff] }
 0x87c   : > { %v1791_v36 = vmul.f32 %v3490_v17, %v4167_v62 }
 0x87d   : > { %v3492_v22 = vpop.eup %3491 }
 0x87e   : > { %v1790_v25 = vmul.f32 %v3492_v22, %v3476_v24  ;;  %v1796_v63 = vpack.c.bf16 %v1792_v23, %v1791_v36 }
 0x880   : > { %v1795_v21 = vpack.c.bf16 %v1790_v25, %v1789_v7 }
 0x882   : > { %3060 = vmatprep.mubr.msk.bf16.mxu0 %vm967_vm6, %v1795_v21 }
 0x883   : > { %3061 = vmatmul.mubr.msk.bf16.gmra.mrb[40].mxu0 %vm967_vm6, %v1796_v63 }
 0x884   : > { %3080 = vmatprep.mubr.msk.f32.mxu0 %vm3562_vm8, %v3558_v18 }
 0x94e   : > { %v3058_v13 = vpop.f32.mrb[36].mxu0 }
 0x94f   : > { %v1863_v62 = vpop.f32.mrb[37].mxu0 }
 0x950   : > { %1902 = vrot.lane.b32.xlu0 %v1863_v62, %s3566_s29  ;;  %v3059_v2 = vpop.f32.mrb[38].mxu0 }
 0x951   : > { %v1866_v49 = vpop.f32.mrb[39].mxu0 }
 0x952   : > { %1904 = vrot.lane.b32.xlu1 %v1866_v49, %s3566_s29 }
 0x954   : > { %1906 = vrot.lane.b32.xlu0 %v3058_v13, %s3566_s29 }
 0x956   : > { %1908 = vrot.lane.b32.xlu1 %v3059_v2, %s3566_s29  ;;  %v3062_v24 = vpop.f32.mrb[40].mxu0 }
 0x957   : > { %v1879_v30 = vpop.f32.mrb[41].mxu0 }
 0x958   : > { %1910 = vrot.lane.b32.xlu0 %v1879_v30, %s3566_s29  ;;  %v3063_v27 = vpop.f32.mrb[42].mxu0 }
 0x959   : > { %v1882_v29 = vpop.f32.mrb[43].mxu0 }
 0x95a   : > { %1912 = vrot.lane.b32.xlu1 %v1882_v29, %s3566_s29 }
 0x95c   : > { %1914 = vrot.lane.b32.xlu0 %v3062_v24, %s3566_s29 }
 0x95e   : > { %1916 = vrot.lane.b32.xlu1 %v3063_v27, %s3566_s29 }
 0x9c2   : > { %v1903_v44 = vpop.permute.xlu0 %1902 }
 0x9c3   : > { %v1926_v11 = vsel %vm1385_vm9, %v4100_v5, %v1903_v44 }
 0x9c4   : > { %v1941_v50 = vmul.f32 %v2868_v43, %v1926_v11  ;;  %v1905_v46 = vpop.permute.xlu1 %1904 }
 0x9c5   : > { %v1927_v37 = vsel %vm1385_vm9, %v4104_v10, %v1905_v46 }
 0x9c6   : > { %v1949_v52 = vadd.f32 %v1941_v50, %v1314_v45  ;;  %v1942_v33 = vmul.f32 %v2868_v43, %v1927_v37  ;;  %v1907_v38 = vpop.permute.xlu0 %1906 }
 0x9c7   : > { %v1928_v35 = vsel %vm1385_vm9, %v4098_v4, %v1907_v38 }
 0x9c8   : > { %1986 = vst.msk [vmem:[#allocation3 + $0x11] sm:$0xff] %vm1957_vm11, %v1949_v52  ;;  %v1950_v5 = vadd.f32 %v1942_v33, %v1315_v47  ;;  %v1943_v41 = vmul.f32 %v2868_v43, %v1928_v35  ;;  %v1909_v10 = vpop.permute.xlu1 %1908  ;;  %v3453_v47 = vld [vmem:[%s4622_s10 + $0x28] sm:$0xff]  }
 0x9c9   : > { %v1929_v45 = vsel %vm1385_vm9, %v4102_v8, %v1909_v10  ;;  %2460 = vmatpush1.bf16.msra.mxu1 %v3453_v47 }
 0x9ca   : > { %1987 = vst.msk [vmem:[#allocation3 + $0x21] sm:$0xff] %vm1957_vm11, %v1950_v5  ;;  %v1951_v4 = vadd.f32 %v1943_v41, %v1316_v57  ;;  %v1944_v19 = vmul.f32 %v2868_v43, %v1929_v45  ;;  %v1911_v56 = vpop.permute.xlu0 %1910  ;;  %v2002_v57 = vld [vmem:[#allocation3 + $0x1] sm:$0xff]  ;;  %2461 = vmatprep.subr.bf16.mxu1 %v3564_v61 }
 0x9cb   : > { %v1930_v42 = vsel %vm1385_vm9, %v4108_v0, %v1911_v56 }
 0x9cc   : > { %1988 = vst.msk [vmem:[#allocation3 + $0x31] sm:$0xff] %vm1957_vm11, %v1951_v4  ;;  %v1952_v8 = vadd.f32 %v1944_v19, %v1317_v60  ;;  %v1945_v32 = vmul.f32 %v2868_v43, %v1930_v42  ;;  %v1913_v34 = vpop.permute.xlu1 %1912 }
 0x9cd   : > { %v1931_v55 = vsel %vm1385_vm9, %v4112_v16, %v1913_v34  ;;  %2462 = vmatpush1.bf16.msra.mxu1 %v3454_v9 }
 0x9ce   : > { %1989 = vst.msk [vmem:[#allocation3 + $0x41] sm:$0xff] %vm1957_vm11, %v1952_v8  ;;  %v1953_v0 = vadd.f32 %v1945_v32, %v1318_v12  ;;  %v1946_v1 = vmul.f32 %v2868_v43, %v1931_v55  ;;  %v1915_v15 = vpop.permute.xlu0 %1914  ;;  %2463 = vmatprep.subr.bf16.mxu1 %v3564_v61 }
 0x9cf   : > { %v1932_v59 = vsel %vm1385_vm9, %v4106_v14, %v1915_v15  ;;  %v2003_v60 = vld [vmem:[#allocation3 + $0x11] sm:$0xff] }
 0x9d0   : > { %v2011_v17 = vld [vmem:[#allocation3 + $0x12] sm:$0xff]  ;;  %1990 = vst.msk [vmem:[#allocation3 + $0x51] sm:$0xff] %vm1957_vm11, %v1953_v0  ;;  %v1954_v16 = vadd.f32 %v1946_v1, %v1319_v48  ;;  %v1947_v22 = vmul.f32 %v2868_v43, %v1932_v59  ;;  %v1917_v23 = vpop.permute.xlu1 %1916  ;;  %v3290_v7 = vpack.i.bf16 %v2003_v60, %v2002_v57 }
 0x9d1   : > { %v3295_v25 = vpack.i.bf16 %v2011_v17, %v2010_v53  ;;  %v1933_v6 = vsel %vm1385_vm9, %v4110_v20, %v1917_v23  ;;  %v2059_v48 = vld [vmem:[#allocation3 + $0x22] sm:$0xff]  ;;  %v4641_v20 = vmax.f32 %v4049_v54, 0.0  ;;  %v3455_v54 = vld [vmem:[%s4622_s10 + $0x38] sm:$0xff]   ;;  %v4336_v29 = vld [vmem:[#allocation3 + $0x10] sm:$0xff] }
 0x9d2   : > { %1991 = vst.msk [vmem:[#allocation3 + $0x61] sm:$0xff] %vm1957_vm11, %v1954_v16  ;;  %v1955_v12 = vadd.f32 %v1947_v22, %v1320_v26  ;;  %v1948_v14 = vmul.f32 %v2868_v43, %v1933_v6  ;;  %3291 = vrot.lane.b32.xlu0 %v3290_v7, %s3567_s30  ;;  %v4328_v24 = vld [vmem:[#allocation3 + $0x20] sm:$0xff]  ;;  %2464 = vmatpush1.bf16.msra.mxu1 %v3455_v54  ;;  %v2050_v59 = vld [vmem:[#allocation3 + $0x90] sm:$0xff] }
 0x9d3   : > { %3296 = vrot.lane.b32.xlu1 %v3295_v25, %s3560_s2  ;;  %v2060_v36 = vld [vmem:[#allocation3 + $0x32] sm:$0xff]  ;;  %v3315_v39 = vpack.i.bf16 %v4328_v24, %v4336_v29  ;;  %2465 = vmatprep.subr.bf16.mxu1 %v3564_v61  ;;  %v3456_v43 = vld [vmem:[%s4622_s10 + $0x40] sm:$0xff]   ;;  %v3325_v37 = vpack.i.bf16 %v2059_v48, %v2011_v17 }
 0x9d4   : > { %1992 = vst.msk [vmem:[#allocation3 + $0x71] sm:$0xff] %vm1957_vm11, %v1955_v12  ;;  %v1956_v21 = vadd.f32 %v1948_v14, %v4641_v20  ;;  %v2351_v63 = vpack.c.bf16 %v2060_v36, %v2059_v48  ;;  %v2028_v58 = vld [vmem:[#allocation3 + $0x31] sm:$0xff]  ;;  %v2027_v44 = vld [vmem:[#allocation3 + $0x21] sm:$0xff]  ;;  %v3345_v33 = vpack.i.bf16 %v2060_v36, %v2059_v48 }
 0x9d5   : > { %v2029_v26 = vld [vmem:[#allocation3 + $0x41] sm:$0xff]  ;;  %v4316_v13 = vld [vmem:[#allocation3 + $0x30] sm:$0xff]  ;;  %v3320_v61 = vpack.i.bf16 %v2027_v44, %v2003_v60  ;;  %v3335_v51 = vpack.i.bf16 %v2028_v58, %v2027_v44 }
 0x9d6   : > { %v4318_v62 = vld [vmem:[#allocation3 + $0x40] sm:$0xff]  ;;  %1993 = vst.msk [vmem:[#allocation3 + $0x81] sm:$0xff] %vm1957_vm11, %v1956_v21  ;;  %2879 = vmatprep.mubr.msk.bf16.mxu1 %vm1957_vm11, %v2351_v63  ;;  %v3305_v2 = vpack.i.bf16 %v2029_v26, %v2028_v58  ;;  %2466 = vmatpush1.bf16.msra.mxu1 %v3456_v43  ;;  %v3330_v52 = vpack.i.bf16 %v4316_v13, %v4328_v24  ;;  %v2058_v60 = vld [vmem:[#allocation3 + $0x91] sm:$0xff] }
 0x9d7   : > { %v3300_v49 = vpack.i.bf16 %v4318_v62, %v4316_v13  ;;  %v4330_v30 = vld [vmem:[#allocation3 + $0x42] sm:$0xff]  ;;  %v4332_v27 = vld [vmem:[#allocation3 + $0x52] sm:$0xff] }
 0x9d8   : > { %3306 = vrot.lane.b32.xlu0 %v3305_v2, %s3559_s20  ;;  %v2353_v31 = vpack.c.bf16 %v4332_v27, %v4330_v30  ;;  %v3310_v3 = vpack.i.bf16 %v4330_v30, %v2060_v36  ;;  %v4361_v38 = vld [vmem:[#allocation3 + $0x50] sm:$0xff]  ;;  %v3365_v10 = vpack.i.bf16 %v4332_v27, %v4330_v30  ;;  %v1994_v14 = vld [vmem:[#allocation3] sm:$0xff] }
 0x9d9   : > { %3301 = vrot.lane.b32.xlu1 %v3300_v49, %s3568_s27  ;;  %v4351_v50 = vld [vmem:[#allocation3 + $0x62] sm:$0xff]  ;;  %v2054_v35 = vld [vmem:[#allocation3 + $0x51] sm:$0xff]  ;;  %v3350_v5 = vpack.i.bf16 %v4361_v38, %v4318_v62 }
 0x9da   : > { %v3355_v41 = vpack.i.bf16 %v2054_v35, %v2029_v26  ;;  %v4376_v47 = vld [vmem:[#allocation3 + $0x60] sm:$0xff]  ;;  %v3390_v55 = vpack.i.bf16 %v4351_v50, %v4332_v27 }
 0x9db   : > { %v4347_v11 = vld [vmem:[#allocation3 + $0x72] sm:$0xff]  ;;  %v2031_v8 = vld [vmem:[#allocation3 + $0x61] sm:$0xff]  ;;  %v3380_v32 = vpack.i.bf16 %v4376_v47, %v4361_v38 }
 0x9dc   : > { %3316 = vrot.lane.b32.xlu0 %v3315_v39, %s3568_s27  ;;  %v2355_v46 = vpack.c.bf16 %v4347_v11, %v4351_v50  ;;  %v2032_v4 = vld [vmem:[#allocation3 + $0x71] sm:$0xff]  ;;  %v3385_v34 = vpack.i.bf16 %v2031_v8, %v2054_v35  ;;  %v3415_v1 = vpack.i.bf16 %v4347_v11, %v4351_v50 }
 0x9dd   : > { %3311 = vrot.lane.b32.xlu1 %v3310_v3, %s3569_s19  ;;  %v2033_v40 = vld [vmem:[#allocation3 + $0x81] sm:$0xff]  ;;  %v4373_v19 = vld [vmem:[#allocation3 + $0x70] sm:$0xff]  ;;  %v3400_v53 = vpack.i.bf16 %v2032_v4, %v2031_v8 }
 0x9de   : > { %v2025_v45 = vld [vmem:[#allocation3 + $0x80] sm:$0xff]  ;;  %v3375_v56 = vpack.i.bf16 %v2033_v40, %v2032_v4  ;;  %v3395_v57 = vpack.i.bf16 %v4373_v19, %v4376_v47  ;;  %v3425_v16 = vpack.i.bf16 %v2058_v60, %v2033_v40 }
 0x9df   : > { %v3370_v42 = vpack.i.bf16 %v2025_v45, %v4373_v19  ;;  %v4390_v0 = vld [vmem:[#allocation3 + $0x82] sm:$0xff]  ;;  %v3420_v17 = vpack.i.bf16 %v2050_v59, %v2025_v45 }
 0x9e0   : > { %3326 = vrot.lane.b32.xlu0 %v3325_v37, %s3569_s19  ;;  %v3410_v15 = vpack.i.bf16 %v4390_v0, %v4347_v11 }
 0x9e1   : > { %3321 = vrot.lane.b32.xlu1 %v3320_v61, %s3559_s20 }
 0x9e4   : > { %3336 = vrot.lane.b32.xlu0 %v3335_v51, %s3570_s21 }
 0x9e5   : > { %3331 = vrot.lane.b32.xlu1 %v3330_v52, %s3561_s25 }
 0x9e8   : > { %3346 = vrot.lane.b32.xlu0 %v3345_v33, %s3560_s2 }
 0x9e9   : > { %3341 = vrot.lane.b32.xlu1 %v3335_v51, %s3567_s30 }
 0x9ec   : > { %3351 = vrot.lane.b32.xlu0 %v3350_v5, %s3561_s25 }
 0x9ed   : > { %3356 = vrot.lane.b32.xlu1 %v3355_v41, %s3570_s21 }
 0x9f0   : > { %3361 = vrot.lane.b32.xlu0 %v3355_v41, %s3567_s30 }
 0x9f1   : > { %3366 = vrot.lane.b32.xlu1 %v3365_v10, %s3560_s2 }
 0x9f4   : > { %3376 = vrot.lane.b32.xlu0 %v3375_v56, %s3559_s20 }
 0x9f5   : > { %3371 = vrot.lane.b32.xlu1 %v3370_v42, %s3568_s27 }
 0x9f8   : > { %3381 = vrot.lane.b32.xlu0 %v3380_v32, %s3568_s27  ;;  %s2885_s27 = sshll.u32 %s3682_s9, 4  ;;  %s3572_s9 = smov [#allocation5]  }
 0x9f9   : > { %3386 = vrot.lane.b32.xlu1 %v3385_v34, %s3559_s20  ;;  %s3497_s22 = sshll.u32 %s3572_s9, 4  ;;  %s3498_s22 = int_to_ptr.vmem [resolvable:$false] %s3497_s22 }
 0x9fa   : > { %s3499_s1 = scalar_lea.vmem %s3498_s22, 32 }
 0x9fc   : > { %3391 = vrot.lane.b32.xlu0 %v3390_v55, %s3569_s19 }
 0x9fd   : > { %3396 = vrot.lane.b32.xlu1 %v3395_v57, %s3561_s25 }
 0xa00   : > { %3401 = vrot.lane.b32.xlu0 %v3400_v53, %s3570_s21 }
 0xa01   : > { %3406 = vrot.lane.b32.xlu1 %v3400_v53, %s3567_s30  ;;  %s514_s30 = sand.u32 1, %s3547_s24  }
 0xa02   : > { %s2752_s20 = scalar_lea.sflag [#allocation6], %s514_s30 }
 0xa04   : > { %3416 = vrot.lane.b32.xlu0 %v3415_v1, %s3560_s2 }
 0xa05   : > { %3411 = vrot.lane.b32.xlu1 %v3410_v15, %s3569_s19 }
 0xa08   : > { %3421 = vrot.lane.b32.xlu0 %v3420_v17, %s3561_s25 }
 0xa09   : > { %3426 = vrot.lane.b32.xlu1 %v3425_v16, %s3570_s21  ;;  %s4570_s21 = scalar_lea.hbm %s4628_s16, %s2885_s27 }
 0xa44   : > { %v3292_v22 = vpop.permute.xlu0 %3291 }
 0xa45   : > { %v3297_v23 = vpop.permute.xlu1 %3296  ;;  %v3294_v6 = vunpack.i.h.bf16 %v3292_v22  ;;  %v3293_v12 = vunpack.i.l.bf16 %v3292_v22 }
 0xa46   : > { %v3299_v36 = vunpack.i.h.bf16 %v3297_v23  ;;  %v3298_v20 = vunpack.i.l.bf16 %v3297_v23 }
 0xa47   : > { %v2292_v21 = vsel %vm1957_vm11, %v4336_v29, %v3294_v6  ;;  %v2291_v63 = vsel %vm1957_vm11, %v1994_v14, %v3293_v12 }
 0xa48   : > { %v2300_v54 = vsel %vm635_vm3, %v2292_v21, %v3299_v36  ;;  %v2299_v39 = vsel %vm635_vm3, %v2291_v63, %v3298_v20 }
 0xa4a   : > { %v4402_v7 = vpop.permute.xlu0 %3306 }
 0xa4b   : > { %v3302_v25 = vpop.permute.xlu1 %3301  ;;  %v3309_v59 = vunpack.i.h.bf16 %v4402_v7  ;;  %v3308_v60 = vunpack.i.l.bf16 %v4402_v7 }
 0xa4c   : > { %v3304_v16 = vunpack.i.h.bf16 %v3302_v25  ;;  %v3303_v22 = vunpack.i.l.bf16 %v3302_v25 }
 0xa4e   : > { %v3317_v9 = vpop.permute.xlu0 %3316 }
 0xa4f   : > { %v4404_v48 = vpop.permute.xlu1 %3311  ;;  %v3319_v58 = vunpack.i.h.bf16 %v3317_v9  ;;  %v3318_v26 = vunpack.i.l.bf16 %v3317_v9 }
 0xa50   : > { %v3314_v12 = vunpack.i.h.bf16 %v4404_v48  ;;  %v3313_v14 = vunpack.i.l.bf16 %v4404_v48 }
 0xa51   : > { %v2308_v44 = vsel %vm2307_vm14, %v2299_v39, %v3318_v26  ;;  %v2309_v37 = vsel %vm2307_vm14, %v2300_v54, %v3319_v58 }
 0xa52   : > { %v3327_v2 = vpop.permute.xlu0 %3326 }
 0xa53   : > { %v3322_v49 = vpop.permute.xlu1 %3321  ;;  %v3329_v61 = vunpack.i.h.bf16 %v3327_v2  ;;  %v3328_v51 = vunpack.i.l.bf16 %v3327_v2 }
 0xa54   : > { %v3324_v3 = vunpack.i.h.bf16 %v3322_v49  ;;  %v3323_v43 = vunpack.i.l.bf16 %v3322_v49 }
 0xa56   : > { %v2316_v29 = vsel %vm967_vm6, %v2308_v44, %v3323_v43  ;;  %v2317_v52 = vsel %vm967_vm6, %v2309_v37, %v3324_v3  ;;  %v3337_v33 = vpop.permute.xlu0 %3336 }
 0xa57   : > { %v3332_v35 = vpop.permute.xlu1 %3331  ;;  %v3339_v5 = vunpack.i.h.bf16 %v3337_v33  ;;  %v3338_v41 = vunpack.i.l.bf16 %v3337_v33  ;;  %v2325_v45 = vsel %vm2324_vm15, %v2316_v29, %v3328_v51  ;;  %v2326_v4 = vsel %vm2324_vm15, %v2317_v52, %v3329_v61 }
 0xa58   : > { %v3334_v10 = vunpack.i.h.bf16 %v3332_v35  ;;  %v3333_v40 = vunpack.i.l.bf16 %v3332_v35 }
 0xa5a   : > { %v2333_v56 = vsel %vm976_vm7, %v2325_v45, %v3333_v40  ;;  %v2334_v42 = vsel %vm976_vm7, %v2326_v4, %v3334_v10  ;;  %v3347_v8 = vpop.permute.xlu0 %3346 }
 0xa5b   : > { %v3342_v32 = vpop.permute.xlu1 %3341  ;;  %v2342_v34 = vsel %vm2341_vm0, %v2333_v56, %v3338_v41  ;;  %v2343_v55 = vsel %vm2341_vm0, %v2334_v42, %v3339_v5  ;;  %v3349_v57 = vunpack.i.h.bf16 %v3347_v8  ;;  %v3348_v53 = vunpack.i.l.bf16 %v3347_v8 }
 0xa5c   : > { %v3344_v1 = vunpack.i.h.bf16 %v3342_v32  ;;  %v3343_v15 = vunpack.i.l.bf16 %v3342_v32  ;;  %v2350_v17 = vpack.c.bf16 %v2343_v55, %v2342_v34 }
 0xa5e   : > { %v2294_v23 = vsel %vm1957_vm11, %v4316_v13, %v3344_v1  ;;  %v2293_v6 = vsel %vm1957_vm11, %v4328_v24, %v3343_v15  ;;  %2482 = vmatmul.mubr.bf16.vlgmr.msra.gmra.mrb[20].mxu1 %v2350_v17  ;;  %v3352_v20 = vpop.permute.xlu0 %3351 }
 0xa5f   : > { %v2302_v9 = vsel %vm635_vm3, %v2294_v23, %v3349_v57  ;;  %v2301_v36 = vsel %vm635_vm3, %v2293_v6, %v3348_v53  ;;  %v3357_v7 = vpop.permute.xlu1 %3356  ;;  %v3354_v63 = vunpack.i.h.bf16 %v3352_v20  ;;  %v3353_v13 = vunpack.i.l.bf16 %v3352_v20  ;;  %2880 = vmatprep.mubr.msk.bf16.mxu1 %vm1957_vm11, %v2353_v31 }
 0xa60   : > { %v2310_v21 = vsel %vm2307_vm14, %v2301_v36, %v3303_v22  ;;  %v2311_v25 = vsel %vm2307_vm14, %v2302_v9, %v3304_v16  ;;  %v3359_v54 = vunpack.i.h.bf16 %v3357_v7  ;;  %v3358_v39 = vunpack.i.l.bf16 %v3357_v7 }
 0xa61   : > { %v2318_v24 = vsel %vm967_vm6, %v2310_v21, %v3308_v60  ;;  %v2319_v48 = vsel %vm967_vm6, %v2311_v25, %v3309_v59 }
 0xa62   : > { %v2327_v58 = vsel %vm2324_vm15, %v2318_v24, %v3313_v14  ;;  %v2328_v26 = vsel %vm2324_vm15, %v2319_v48, %v3314_v12  ;;  %v3362_v3 = vpop.permute.xlu0 %3361  ;;  %v2066_v12 = vld [vmem:[#allocation3 + $0x92] sm:$0xff] }
 0xa63   : > { %v2335_v2 = vsel %vm976_vm7, %v2327_v58, %v3353_v13  ;;  %v2336_v49 = vsel %vm976_vm7, %v2328_v26, %v3354_v63  ;;  %v3367_v43 = vpop.permute.xlu1 %3366  ;;  %v3364_v31 = vunpack.i.h.bf16 %v3362_v3  ;;  %v3363_v44 = vunpack.i.l.bf16 %v3362_v3 }
 0xa64   : > { %v2344_v30 = vsel %vm2341_vm0, %v2335_v2, %v3358_v39  ;;  %v2345_v27 = vsel %vm2341_vm0, %v2336_v49, %v3359_v54  ;;  %v3369_v29 = vunpack.i.h.bf16 %v3367_v43  ;;  %v3368_v52 = vunpack.i.l.bf16 %v3367_v43 }
 0xa65   : > { %v2352_v37 = vpack.c.bf16 %v2345_v27, %v2344_v30  ;;  %v2296_v33 = vsel %vm1957_vm11, %v4361_v38, %v3364_v31  ;;  %v2295_v35 = vsel %vm1957_vm11, %v4318_v62, %v3363_v44  ;;  %v2357_v63 = vpack.c.bf16 %v2066_v12, %v4390_v0 }
 0xa66   : > { %v4445_v61 = vpop.permute.xlu0 %3376  ;;  %v2304_v45 = vsel %vm635_vm3, %v2296_v33, %v3369_v29  ;;  %v2303_v4 = vsel %vm635_vm3, %v2295_v35, %v3368_v52 }
 0xa67   : > { %v3372_v51 = vpop.permute.xlu1 %3371  ;;  %2490 = vmatmul.mubr.bf16.gmra.mrb[24].mxu1 %v2352_v37  ;;  %v3379_v26 = vunpack.i.h.bf16 %v4445_v61  ;;  %v3378_v2 = vunpack.i.l.bf16 %v4445_v61 }
 0xa68   : > { %2881 = vmatprep.mubr.msk.bf16.mxu1 %vm1957_vm11, %v2355_v46  ;;  %v3374_v13 = vunpack.i.h.bf16 %v3372_v51  ;;  %v3373_v24 = vunpack.i.l.bf16 %v3372_v51 }
 0xa6a   : > { %v3382_v5 = vpop.permute.xlu0 %3381 }
 0xa6b   : > { %v3387_v41 = vpop.permute.xlu1 %3386  ;;  %v3384_v10 = vunpack.i.h.bf16 %v3382_v5  ;;  %v3383_v40 = vunpack.i.l.bf16 %v3382_v5 }
 0xa6c   : > { %v3389_v56 = vunpack.i.h.bf16 %v3387_v41  ;;  %v3388_v42 = vunpack.i.l.bf16 %v3387_v41 }
 0xa6d   : > { %v2312_v11 = vsel %vm2307_vm14, %v2303_v4, %v3383_v40  ;;  %v2313_v50 = vsel %vm2307_vm14, %v2304_v45, %v3384_v10  ;;  %v2869_v10 = vld [vmem:[%s4623_s11] ss:$0 sm:$0xff] }
 0xa6e   : > { %v3392_v46 = vpop.permute.xlu0 %3391  ;;  %v2320_v62 = vsel %vm967_vm6, %v2312_v11, %v3388_v42  ;;  %v2321_v34 = vsel %vm967_vm6, %v2313_v50, %v3389_v56 }
 0xa6f   : > { %v3397_v8 = vpop.permute.xlu1 %3396  ;;  %v3394_v38 = vunpack.i.h.bf16 %v3392_v46  ;;  %v3393_v32 = vunpack.i.l.bf16 %v3392_v46 }
 0xa70   : > { %v3399_v55 = vunpack.i.h.bf16 %v3397_v8  ;;  %v3398_v57 = vunpack.i.l.bf16 %v3397_v8 }
 0xa71   : > { %v2329_v53 = vsel %vm2324_vm15, %v2320_v62, %v3393_v32  ;;  %v2330_v1 = vsel %vm2324_vm15, %v2321_v34, %v3394_v38 }
 0xa72   : > { %v3402_v15 = vpop.permute.xlu0 %3401  ;;  %v2337_v16 = vsel %vm976_vm7, %v2329_v53, %v3398_v57  ;;  %v2338_v22 = vsel %vm976_vm7, %v2330_v1, %v3399_v55 }
 0xa73   : > { %v3407_v59 = vpop.permute.xlu1 %3406  ;;  %v3404_v60 = vunpack.i.h.bf16 %v3402_v15  ;;  %v3403_v17 = vunpack.i.l.bf16 %v3402_v15 }
 0xa74   : > { %v3409_v23 = vunpack.i.h.bf16 %v3407_v59  ;;  %v3408_v6 = vunpack.i.l.bf16 %v3407_v59 }
 0xa75   : > { %v2346_v14 = vsel %vm2341_vm0, %v2337_v16, %v3403_v17  ;;  %v2347_v9 = vsel %vm2341_vm0, %v2338_v22, %v3404_v60 }
 0xa76   : > { %v3417_v36 = vpop.permute.xlu0 %3416  ;;  %v2354_v7 = vpack.c.bf16 %v2347_v9, %v2346_v14  ;;  %v2298_v48 = vsel %vm1957_vm11, %v4373_v19, %v3409_v23  ;;  %v2297_v58 = vsel %vm1957_vm11, %v4376_v47, %v3408_v6 }
 0xa77   : > { %v3412_v20 = vpop.permute.xlu1 %3411  ;;  %v3419_v21 = vunpack.i.h.bf16 %v3417_v36  ;;  %v3418_v25 = vunpack.i.l.bf16 %v3417_v36 }
 0xa78   : > { %2498 = vmatmul.mubr.bf16.gmra.mrb[28].mxu1 %v2354_v7  ;;  %v3414_v3 = vunpack.i.h.bf16 %v3412_v20  ;;  %v3413_v19 = vunpack.i.l.bf16 %v3412_v20 }
 0xa79   : > { %v2305_v49 = vsel %vm635_vm3, %v2297_v58, %v3418_v25  ;;  %v2306_v54 = vsel %vm635_vm3, %v2298_v48, %v3419_v21  ;;  %2882 = vmatprep.mubr.msk.bf16.mxu1 %vm1957_vm11, %v2357_v63  ;;  %v2588_v25 = vld [vmem:[%s4624_s12] sm:$0xff]  ;;  %v2589_v63 = vld [vmem:[%s4624_s12 + $0x8] sm:$0xff]  ;;  %v2591_v58 = vld [vmem:[%s4624_s12 + $0x18] sm:$0xff] }
 0xa7a   : > { %v2314_v0 = vsel %vm2307_vm14, %v2305_v49, %v3373_v24  ;;  %v2315_v39 = vsel %vm2307_vm14, %v2306_v54, %v3374_v13  ;;  %v3422_v43 = vpop.permute.xlu0 %3421  ;;  %v2590_v13 = vld [vmem:[%s4624_s12 + $0x10] sm:$0xff]  ;;  %v3571_v24 = vmov 0.0|0.0   ;;  %v3095_v48 = vpack.c.bf16 %v2589_v63, %v2588_v25  ;;  %v2593_v49 = vld [vmem:[%s4624_s12 + $0x28] sm:$0xff]  ;;  %v2674_v25 = vld [vmem:[%s4626_s14 + $0x18] sm:$0xff] }
 0xa7b   : > { %v3427_v30 = vpop.permute.xlu1 %3426  ;;  %v2322_v47 = vsel %vm967_vm6, %v2314_v0, %v3378_v2  ;;  %v2323_v27 = vsel %vm967_vm6, %v2315_v39, %v3379_v26  ;;  %v3424_v31 = vunpack.i.h.bf16 %v3422_v43  ;;  %v3423_v44 = vunpack.i.l.bf16 %v3422_v43  ;;  %3094 = vmatprep.subr.bf16.mxu0 %v3571_v24  ;;  %v2592_v2 = vld [vmem:[%s4624_s12 + $0x20] sm:$0xff]  ;;  %v2594_v0 = vld [vmem:[%s4624_s12 + $0x30] sm:$0xff]  ;;  %v2595_v39 = vld [vmem:[%s4624_s12 + $0x38] sm:$0xff] }
 0xa7c   : > { %v2331_v37 = vsel %vm2324_vm15, %v2322_v47, %v3413_v19  ;;  %v2332_v61 = vsel %vm2324_vm15, %v2323_v27, %v3414_v3  ;;  %v3429_v51 = vunpack.i.h.bf16 %v3427_v30  ;;  %v3428_v29 = vunpack.i.l.bf16 %v3427_v30  ;;  %3096 = vmatpush3.bf16.msra.mxu0 %v3095_v48 }
 0xa7d   : > { %v2339_v52 = vsel %vm976_vm7, %v2331_v37, %v3423_v44  ;;  %v2340_v33 = vsel %vm976_vm7, %v2332_v61, %v3424_v31  ;;  %v3098_v26 = vpack.c.bf16 %v2591_v58, %v2590_v13  ;;  %3097 = vmatprep.subr.bf16.mxu0 %v3571_v24  ;;  %v3101_v54 = vpack.c.bf16 %v2593_v49, %v2592_v2  ;;  %v2596_v13 = vld [vmem:[%s4625_s13] sm:$0x1] }
 0xa7e   : > { %v2348_v35 = vsel %vm2341_vm0, %v2339_v52, %v3428_v29  ;;  %v2349_v5 = vsel %vm2341_vm0, %v2340_v33, %v3429_v51  ;;  %v3104_v3 = vpack.c.bf16 %v2595_v39, %v2594_v0 }
 0xa7f   : > { %v2356_v41 = vpack.c.bf16 %v2349_v5, %v2348_v35 }
 0xa80   : > { %3099 = vmatpush3.bf16.msra.mxu0 %v3098_v26 }
 0xa81   : > { %2506 = vmatmul.mubr.bf16.gmra.mrb[32].mxu1 %v2356_v41  ;;  %3100 = vmatprep.subr.bf16.mxu0 %v3571_v24 }
 0xa84   : > { %3102 = vmatpush3.bf16.msra.mxu0 %v3101_v54 }
 0xa85   : > { %3103 = vmatprep.subr.bf16.mxu0 %v3571_v24 }
 0xa88   : > { %3105 = vmatpush3.bf16.msra.mxu0 %v3104_v3 }
 0xa89   : > { %3106 = vmatprep.subr.bf16.mxu0 %v3571_v24 }
 0xb31   : > { %v2483_v40 = vpop.f32.mrb[20].mxu1 }
 0xb32   : > { %v4490_v45 = vadd.f32 %v2869_v10, %v2483_v40  ;;  %v2485_v4 = vpop.f32.mrb[21].mxu1 }
 0xb33   : > { %v2486_v56 = vpop.f32.mrb[22].mxu1 }
 0xb34   : > { %v2514_v42 = vmax.f32 %v4490_v45, 0.0  ;;  %v2487_v11 = vadd.f32 %v2869_v10, %v2486_v56  ;;  %v2488_v50 = vpop.f32.mrb[23].mxu1 }
 0xb36   : > { %v2515_v46 = vmax.f32 %v2487_v11, 0.0  ;;  %2530 = vrot.lane.b32.xlu0 %v2514_v42, %s3561_s25 }
 0xb38   : > { %2532 = vrot.lane.b32.xlu1 %v2515_v46, %s3561_s25 }
 0xb3a   : > { %v2491_v8 = vpop.f32.mrb[24].mxu1 }
 0xb3b   : > { %v2492_v38 = vadd.f32 %v2869_v10, %v2491_v8  ;;  %v2493_v32 = vpop.f32.mrb[25].mxu1 }
 0xb3c   : > { %v2494_v62 = vpop.f32.mrb[26].mxu1 }
 0xb3d   : > { %v2516_v34 = vmax.f32 %v2492_v38, 0.0  ;;  %v2495_v55 = vadd.f32 %v2869_v10, %v2494_v62  ;;  %v2496_v57 = vpop.f32.mrb[27].mxu1 }
 0xb3f   : > { %v2517_v53 = vmax.f32 %v2495_v55, 0.0  ;;  %2534 = vrot.lane.b32.xlu0 %v2516_v34, %s3561_s25 }
 0xb41   : > { %2536 = vrot.lane.b32.xlu1 %v2517_v53, %s3561_s25 }
 0xb4b   : > { %v2499_v1 = vpop.f32.mrb[28].mxu1 }
 0xb4c   : > { %v2500_v15 = vadd.f32 %v2869_v10, %v2499_v1  ;;  %v2501_v59 = vpop.f32.mrb[29].mxu1 }
 0xb4d   : > { %v2502_v60 = vpop.f32.mrb[30].mxu1 }
 0xb4e   : > { %v2518_v17 = vmax.f32 %v2500_v15, 0.0  ;;  %v2503_v16 = vadd.f32 %v2869_v10, %v2502_v60  ;;  %v2504_v22 = vpop.f32.mrb[31].mxu1 }
 0xb50   : > { %v2519_v23 = vmax.f32 %v2503_v16, 0.0  ;;  %2538 = vrot.lane.b32.xlu0 %v2518_v17, %s3561_s25 }
 0xb52   : > { %2540 = vrot.lane.b32.xlu1 %v2519_v23, %s3561_s25 }
 0xb54   : > { %v2507_v6 = vpop.f32.mrb[32].mxu1 }
 0xb55   : > { %v2508_v12 = vadd.f32 %v2869_v10, %v2507_v6  ;;  %v2509_v14 = vpop.f32.mrb[33].mxu1 }
 0xb56   : > { %v2510_v9 = vpop.f32.mrb[34].mxu1  ;;  %v2671_v14 = vld [vmem:[%s4626_s14] sm:$0xff] }
 0xb57   : > { %v2520_v36 = vmax.f32 %v2508_v12, 0.0  ;;  %v2511_v20 = vadd.f32 %v2869_v10, %v2510_v9  ;;  %v2512_v7 = vpop.f32.mrb[35].mxu1  ;;  %v2672_v9 = vld [vmem:[%s4626_s14 + $0x8] sm:$0xff] }
 0xb59   : > { %v2521_v21 = vmax.f32 %v2511_v20, 0.0  ;;  %2542 = vrot.lane.b32.xlu0 %v2520_v36, %s3561_s25  ;;  %v3107_v20 = vpack.c.bf16 %v2672_v9, %v2671_v14 }
 0xb5b   : > { %2544 = vrot.lane.b32.xlu1 %v2521_v21, %s3561_s25 }
 0xba8   : > { %v2531_v19 = vpop.permute.xlu0 %2530 }
 0xba9   : > { %v2554_v27 = vadd.f32 %v2531_v19, %v2514_v42 }
 0xbaa   : > { %v2533_v43 = vpop.permute.xlu1 %2532 }
 0xbab   : > { %v2555_v47 = vadd.f32 %v2533_v43, %v2515_v46  ;;  %v2562_v61 = vsel %vm635_vm3, %v2554_v27, 0.0 }
 0xbad   : > { %v2563_v37 = vsel %vm635_vm3, %v2555_v47, 0.0 }
 0xbae   : > { %v2564_v52 = vadd.f32 %v2563_v37, %v2562_v61 }
 0xbb1   : > { %v2535_v30 = vpop.permute.xlu0 %2534 }
 0xbb2   : > { %v2556_v31 = vadd.f32 %v2535_v30, %v2516_v34 }
 0xbb3   : > { %v2537_v44 = vpop.permute.xlu1 %2536 }
 0xbb4   : > { %v2565_v51 = vsel %vm635_vm3, %v2556_v31, 0.0  ;;  %v2557_v29 = vadd.f32 %v2537_v44, %v2517_v53 }
 0xbb5   : > { %v2566_v35 = vadd.f32 %v2565_v51, %v2564_v52 }
 0xbb6   : > { %v2567_v41 = vsel %vm635_vm3, %v2557_v29, 0.0 }
 0xbb7   : > { %v2568_v4 = vadd.f32 %v2567_v41, %v2566_v35 }
 0xbc2   : > { %v2539_v33 = vpop.permute.xlu0 %2538 }
 0xbc3   : > { %v2558_v5 = vadd.f32 %v2539_v33, %v2518_v17  ;;  %v651_v17 = vrot.slane %v3860_v28, 4 }
 0xbc4   : > { %v2541_v10 = vpop.permute.xlu1 %2540 }
 0xbc5   : > { %v2569_v40 = vsel %vm635_vm3, %v2558_v5, 0.0  ;;  %v2559_v45 = vadd.f32 %v2541_v10, %v2519_v23  ;;  %v652_v16 = vadd.f32 %v651_v17, %v3860_v28  ;;  %v2673_v28 = vld [vmem:[%s4626_s14 + $0x10] sm:$0xff] }
 0xbc6   : > { %v2570_v56 = vadd.f32 %v2569_v40, %v2568_v4  ;;  %v3110_v63 = vpack.c.bf16 %v2674_v25, %v2673_v28 }
 0xbc7   : > { %v2571_v42 = vsel %vm635_vm3, %v2559_v45, 0.0  ;;  %v653_v22 = vrot.slane %v652_v16, 2 }
 0xbc8   : > { %v2572_v46 = vadd.f32 %v2571_v42, %v2570_v56 }
 0xbc9   : > { %v654_v23 = vadd.f32 %v653_v22, %v652_v16 }
 0xbcb   : > { %v2543_v11 = vpop.permute.xlu0 %2542  ;;  %v655_v6 = vrot.slane %v654_v23, 1 }
 0xbcc   : > { %v2560_v50 = vadd.f32 %v2543_v11, %v2520_v36 }
 0xbcd   : > { %v2545_v8 = vpop.permute.xlu1 %2544  ;;  %v656_v12 = vadd.f32 %v655_v6, %v654_v23 }
 0xbce   : > { %v2573_v38 = vsel %vm635_vm3, %v2560_v50, 0.0  ;;  %v2561_v32 = vadd.f32 %v2545_v8, %v2521_v21 }
 0xbcf   : > { %v2574_v62 = vadd.f32 %v2573_v38, %v2572_v46  ;;  %v657_v36 = vmul.f32 0.015625, %v656_v12 }
 0xbd0   : > { %v2575_v34 = vsel %vm635_vm3, %v2561_v32, 0.0 }
 0xbd1   : > { %v2576_v55 = vadd.f32 %v2575_v34, %v2574_v62 }
 0xbd3   : > { %v2577_v57 = vrot.slane %v2576_v55, 4 }
 0xbd5   : > { %v2578_v53 = vadd.f32 %v2577_v57, %v2576_v55 }
 0xbd7   : > { %v2579_v1 = vrot.slane %v2578_v53, 2 }
 0xbd9   : > { %v2580_v15 = vadd.f32 %v2579_v1, %v2578_v53 }
 0xbdb   : > { %v2581_v59 = vrot.slane %v2580_v15, 1 }
 0xbdd   : > { %v2582_v60 = vadd.f32 %v2581_v59, %v2580_v15 }
 0xbdf   : > { %2584 = vrot.lane.b32.xlu0 %v2582_v60, %s3560_s2  ;;  %s515_s2 = scalar_lea.vmem [#allocation5], %s514_s30 }
 0xbe0   : > { %s2764_s29 = sshll.u32 %s515_s2, 4  ;;  %s4572_s29 = int_to_ptr.vmem [resolvable:$true] %s2764_s29 }
 0xbe1   : > { %s3493_s25 = scalar_lea.vmem %s4572_s29, 16  ;;  %p3500_p0 = scmp.lt.s32.totalorder %s4572_s29, %s3498_s22 }
 0xbe2   : > { %p3494_p11 = scmp.ne.s32.totalorder %s4572_s29, %s3493_s25  ;;  %p3501_p1 = scmp.lt.s32.totalorder %s3499_s1, %s3493_s25 }
 0xbe4   : > { %p3495_p12 = pnand %p3494_p11, %p3699_p5  ;;  %p3502_p2 = por %p3501_p1, %p3500_p0 }
 0xbe6   : > { %p3496_p13 = pneg %p3495_p12 }
 0xbe8   : > { %p3503_p3 = pnand %p3502_p2, %p3496_p13 }
 0xc51   : > { %v2585_v7 = vpop.permute.xlu0 %2584 }
 0xc52   : > { %v2587_v21 = vsel %vm635_vm3, %v657_v36, %v2585_v7 }
 0xc53   : > { %3081 = vmatmul.mubr.msk.f32.vlgmr.msra.gmra.mrb[44].mxu0 %vm967_vm6, %v2587_v21 }
 0xc54   : > { %3108 = vmatpush3.bf16.msra.mxu0 %v3107_v20  ;;  %3091 = vmatprep.mubr.msk.f32.mxu0 %vm3562_vm8, %v3558_v18 }
 0xc55   : > { %3109 = vmatprep.subr.bf16.mxu0 %v3571_v24  ;;  %v2675_v24 = vld [vmem:[%s4627_s15] sm:$0x1] }
 0xc58   : > { %3111 = vmatpush3.bf16.msra.mxu0 %v3110_v63 }
 0xd26   : > { %v2666_v48 = vpop.f32.mrb[44].mxu0 }
 0xd27   : > { %v2667_v58 = vadd.f32 %v2666_v48, %v2596_v13  ;;  %v3082_v26 = vpop.f32.mrb[45].mxu0 }
 0xd29   : > { %v2670_v18 = vmax.f32 %v2667_v58, 0.0 }
 0xd2b   : > { %3092 = vmatmul.mubr.msk.f32.vlgmr.msra.gmra.mrb[46].mxu0 %vm635_vm3, %v2670_v18 }
 0xdfe   : > { %v2745_v2 = vpop.f32.mrb[46].mxu0 }
 0xdff   : > { %v2746_v49 = vadd.f32 %v2745_v2, %v2675_v24  ;;  %v3093_v54 = vpop.f32.mrb[47].mxu0 }
 0xe01   : > { %2750 = vst.msk [vmem:[%s515_s2] sm:$0x1] %vm2749_vm1, %v2746_v49 }
 0xe02   : > { %3506 = shalt.err (!%p3503_p3)
}
 0xe03   : > { %s3507_s30 = scalar_lea.hbm %s4570_s21, 16  ;;  %s3511_s0 = scalar_lea.hbm %s4628_s16, 32 }
 0xe04   : > { %p3508_p4 = scmp.ne.s32.totalorder %s4570_s21, %s3507_s30  ;;  %p3512_p9 = scmp.lt.u32.totalorder %s4570_s21, %s4628_s16 }
 0xe05   : > { %p3513_p10 = scmp.lt.u32.totalorder %s3511_s0, %s3507_s30  ;;  %p3515_p12 = scmp.lt.u32.totalorder %s3507_s30, %s4570_s21 }
 0xe06   : > { %p3509_p7 = pnand %p3508_p4, %p3699_p5 }
 0xe07   : > { %p3514_p11 = por %p3513_p10, %p3512_p9 }
 0xe08   : > { %p3510_p8 = pneg %p3509_p7 }
 0xe09   : > { %p3516_p13 = por %p3515_p12, %p3514_p11 }
 0xe0b   : > { %p3517_p0 = pnand %p3516_p13, %p3510_p8 }
 0xe0d   : > { %3520 = shalt.err (!%p3517_p0)
}
 0xe0e   : > { %3114 = dma.vmem_to_hbm [thread:$0]  (%p3699_p5), %s4572_s29, 16, %s4570_s21, %s2752_s20  }
 0xe0f PF: > { %p3120_p1 = scmp.ge.s32.totalorder %s3555_s26, 2  ;;  %s2776_s1 = sand.u32 1, %s3543_s23  }
 0xe10   : > { %s2777_s25 = scalar_lea.sflag [#allocation6], %s2776_s1 }
 0xe11   : > { %p3117_p2 = pnand %p3120_p1, %p3703_p6 }
 0xe13   : > { %3538 = dma.done.wait (!%p3117_p2), %s2777_s25, 16  }
 0xe14   : > { %3540 = vsyncadd (!%p3117_p2), %s2777_s25, 4294967280  ;;  %s4642_s22 = sld [smem:[#allocation8_spill]]  ;;  %s4643_s25 = sld [smem:[#allocation9_spill]] }
 0xe15   : > { %p28_p3 = scmp.ge.s32.totalorder %s3686_s28, 4   ;;  %s4644_s23 = smov %s3547_s24 }
 0xe16   : > { %s4646_s26 = smov %s3686_s28 }
 0xe17   :  { %30 = sbr.rel (!%p28_p3) target bundleno = 7 (0x7), region = 125 }
 0xe1a   : > { %s4645_s24 = smov %s4642_s22 }
 0xe1e   :  { %2781 = vsyncpa [#allocation6], 1 }
 0xe1f   :  { %2783 = vsyncpa [#allocation6 + $0x1], 1 }

</bundles_post_ra>
